<compile_context>
chip_gen: v7x
topology: tpu7x:2x2x1
jax: 0.10.0
libtpu: 0.0.40
codegen_flags: <defaults>
</compile_context>

<pallas_src>
import functools

import numpy as np
import jax
import jax.numpy as jnp
from jax import lax
from jax.experimental import pallas as pl
from jax.experimental.pallas import tpu as pltpu


def rhc_kernel(gx_ref, u_ref, w_hy_ref, w_out_ref, b_out_ref,
               wc_h_ref, wc_y_ref, wc_t_ref, b_c_ref,
               yhat_out_ref, hp_out_ref,
               hy_sc, c_sc, pred_sc, hp_sc, *, eps):
    T, B, _ = gx_ref.shape
    H = w_out_ref.shape[0]
    C = w_out_ref.shape[1]

    # Constant weights: load once, stay live across the whole unrolled loop.
    w_hy = w_hy_ref[...]      # (H+C, 4H) fused recurrent weight
    w_out = w_out_ref[...]    # (H, C)
    b_out = b_out_ref[...]    # (1, C)
    wc_h = wc_h_ref[...]      # (H, C)
    wc_y = wc_y_ref[...]      # (C, C)
    wc_t = wc_t_ref[...]      # (1, C)
    b_c = b_c_ref[...]        # (1, C)

    # Recurrent state (persists across timesteps inside this one invocation).
    hy_sc[...] = jnp.zeros_like(hy_sc)          # [h | y_bar] packed (B, H+C)
    c_sc[...] = jnp.zeros_like(c_sc)            # (B, H)
    pred_sc[...] = jnp.zeros_like(pred_sc)      # (B, C) committed predictions
    hp_sc[...] = jnp.full_like(hp_sc, -1.0)     # (B, C) halting points

    def step(t, y_hat_prev):
        hy = hy_sc[...]                          # (B, H+C)

        # LSTM gates (PyTorch order i, f, g, o).  x-projection + both biases
        # were hoisted into gx_ref; the recurrent projection is one fused dot.
        gates = gx_ref[t] + jnp.dot(hy, w_hy,
                                    preferred_element_type=jnp.float32)
        sig = jax.nn.sigmoid(gates)              # full-width (B, 4H) EUP call
        th = jnp.tanh(gates)                     # full-width (B, 4H) EUP call
        i_g = sig[:, 0 * H:1 * H]
        f_g = sig[:, 1 * H:2 * H]
        o_g = sig[:, 3 * H:4 * H]
        g_g = th[:, 2 * H:3 * H]
        c_new = f_g * c_sc[...] + i_g * g_g
        h_new = o_g * jnp.tanh(c_new)
        c_sc[...] = c_new

        # output head
        y_hat = jax.nn.sigmoid(
            jnp.dot(h_new, w_out, preferred_element_type=jnp.float32) + b_out)

        # Controller: probs = sigmoid(fc([state, y_hat, t])) with epsilon mix,
        # Bernoulli sample via precomputed uniforms.
        t_f = t.astype(jnp.float32)
        logits = (jnp.dot(h_new, wc_h, preferred_element_type=jnp.float32)
                  + jnp.dot(y_hat, wc_y, preferred_element_type=jnp.float32)
                  + t_f * wc_t + b_c)
        probs = (1.0 - eps) * jax.nn.sigmoid(logits) + eps * 0.05
        halt = u_ref[t] < probs                  # (B, C) bool, a_t == 1

        ybar = hy[:, H:]
        pred = pred_sc[...]
        hp = hp_sc[...]
        # Note: "not yet committed" sentinel is pred == 0.0, matching the
        # reference torch.where(predictions == 0, ...) semantics.
        pred_sc[...] = jnp.where(halt & (pred == 0.0), y_hat, pred)
        ybar_new = jnp.where(halt & (ybar == 0.0), 1.0, ybar)
        hp_sc[...] = jnp.where((hp == -1.0) & halt, t_f, hp)

        # write h and y_bar into adjacent columns of the packed scratch
        hy_sc[:, :H] = h_new
        hy_sc[:, H:] = ybar_new
        return y_hat

    y_hat_last = lax.fori_loop(0, T, step,
                               jnp.zeros((B, C), jnp.float32),
                               unroll=True)

    last_t = jnp.float32(T - 1)
    pred = pred_sc[...]
    hp = hp_sc[...]
    yhat_out_ref[...] = jnp.where(pred == 0.0, y_hat_last, pred)
    hp_out_ref[...] = jnp.where(hp == -1.0, last_t, hp)


def rhc_forward(X, params, epsilon, key):
    T, B, V = X.shape
    H = params["w_hh"].shape[1]          # w_hh: (4H, H)
    C = params["w_out"].shape[0]         # w_out: (C, H)

    # Re-pack PyTorch-shaped params into kernel (in_features, out_features)
    # layouts.  LSTM input is cat(X[t], y_bar), so W_ih splits into x / y parts.
    w_ih = params["w_ih"]                            # (4H, V + C)
    w_x = jnp.transpose(w_ih[:, :V])                 # (V, 4H)
    w_y = jnp.transpose(w_ih[:, V:])                 # (C, 4H)
    w_h = jnp.transpose(params["w_hh"])              # (H, 4H)
    w_hy = jnp.concatenate([w_h, w_y], axis=0)       # (H+C, 4H) fused
    b_lstm = (params["b_ih"] + params["b_hh"]).reshape(1, 1, 4 * H)

    # Hoisted input projection: one big (T*B, V) x (V, 4H) matmul + bias.
    g_x = jnp.einsum("tbv,vg->tbg", X, w_x,
                     preferred_element_type=jnp.float32) + b_lstm   # (T,B,4H)

    w_out_t = jnp.transpose(params["w_out"])         # (H, C)
    b_out = params["b_out"].reshape(1, C)
    w_c = params["w_c"]                              # (C, H + C + 1)
    wc_h = jnp.transpose(w_c[:, :H])                 # (H, C)
    wc_y = jnp.transpose(w_c[:, H:H + C])            # (C, C)
    wc_t = jnp.transpose(w_c[:, H + C:])             # (1, C)
    b_c = params["b_c"].reshape(1, C)

    # Bernoulli halting samples drawn once (replaces in-kernel HW PRNG).
    u = jax.random.uniform(key, (T, B, C), jnp.float32)

    kernel = functools.partial(rhc_kernel, eps=float(epsilon))

    vmem_spec = pl.BlockSpec(memory_space=pltpu.MemorySpace.VMEM)
    y_hat, halt_points = pl.pallas_call(
        kernel,
        out_shape=(jax.ShapeDtypeStruct((B, C), jnp.float32),
                   jax.ShapeDtypeStruct((B, C), jnp.float32)),
        in_specs=[vmem_spec] * 9,
        out_specs=(vmem_spec, vmem_spec),
        scratch_shapes=[
            pltpu.VMEM((B, H + C), jnp.float32),   # packed [h | y_bar]
            pltpu.VMEM((B, H), jnp.float32),       # c
            pltpu.VMEM((B, C), jnp.float32),       # committed predictions
            pltpu.VMEM((B, C), jnp.float32),       # halt_points
        ],
    )(g_x, u, w_hy, w_out_t, b_out, wc_h, wc_y, wc_t, b_c)

    mean_halting_point = jnp.mean(1.0 + halt_points) / (T + 1)
    return y_hat, mean_halting_point


def exponential_decay(n):
    t = np.linspace(0.0, 7.0, n)
    return np.exp(-t / 1.0).astype(np.float32)


if __name__ == "__main__":
    # small deterministic setup: T=8 timesteps, B=8 instances, V=8 variables,
    # nhid=32, nclasses=4
    T, B, V, H, C = 8, 8, 8, 32, 4
    nepochs, epoch = 10, 2

    key = jax.random.PRNGKey(0)
    ks = jax.random.split(key, 10)
    scale = 0.2
    params = {
        "w_ih": scale * jax.random.normal(ks[0], (4 * H, V + C), jnp.float32),
        "w_hh": scale * jax.random.normal(ks[1], (4 * H, H), jnp.float32),
        "b_ih": scale * jax.random.normal(ks[2], (4 * H,), jnp.float32),
        "b_hh": scale * jax.random.normal(ks[3], (4 * H,), jnp.float32),
        "w_out": scale * jax.random.normal(ks[4], (C, H), jnp.float32),
        "b_out": scale * jax.random.normal(ks[5], (C,), jnp.float32),
        "w_c": scale * jax.random.normal(ks[6], (C, H + C + 1), jnp.float32),
        "b_c": scale * jax.random.normal(ks[7], (C,), jnp.float32),
    }
    X = jax.random.normal(ks[8], (T, B, V), jnp.float32)

    epsilon = float(exponential_decay(nepochs)[epoch])   # training-mode epsilon
    y_hat, mean_halting_point = rhc_forward(X, params, epsilon, key=ks[9])
    y_hat = jax.block_until_ready(y_hat)
    mean_halting_point = jax.block_until_ready(mean_halting_point)

    assert y_hat.shape == (B, C)
    assert np.all(np.isfinite(np.asarray(y_hat)))
    assert np.all((np.asarray(y_hat) > 0.0) & (np.asarray(y_hat) < 1.0))
    mhp = float(mean_halting_point)
    assert 0.0 < mhp <= 1.0
    print("KERNEL_OK")
</pallas_src>

<mosaic_0001>
module attributes {stable_mosaic.version = 11 : i64} {
  func.func @rhc_kernel(%arg0: memref<8x8x128xf32, #tpu.memory_space<vmem>>, %arg1: memref<8x8x4xf32, #tpu.memory_space<vmem>>, %arg2: memref<36x128xf32, #tpu.memory_space<vmem>>, %arg3: memref<32x4xf32, #tpu.memory_space<vmem>>, %arg4: memref<1x4xf32, #tpu.memory_space<vmem>>, %arg5: memref<32x4xf32, #tpu.memory_space<vmem>>, %arg6: memref<4x4xf32, #tpu.memory_space<vmem>>, %arg7: memref<1x4xf32, #tpu.memory_space<vmem>>, %arg8: memref<1x4xf32, #tpu.memory_space<vmem>>, %arg9: memref<8x4xf32, #tpu.memory_space<vmem>>, %arg10: memref<8x4xf32, #tpu.memory_space<vmem>>, %arg11: memref<8x36xf32, #tpu.memory_space<vmem>>, %arg12: memref<8x32xf32, #tpu.memory_space<vmem>>, %arg13: memref<8x4xf32, #tpu.memory_space<vmem>>, %arg14: memref<8x4xf32, #tpu.memory_space<vmem>>) attributes {dimension_semantics = [], scalar_prefetch = 0 : i64, scratch_operands = 4 : i64, tpu.core_type = #tpu.core_type<tc>} {
    %c0 = arith.constant 0 : index
    %c0_0 = arith.constant 0 : index
    %0 = vector.load %arg2[%c0, %c0_0] : memref<36x128xf32, #tpu.memory_space<vmem>>, vector<36x128xf32>
    %c0_1 = arith.constant 0 : index
    %c0_2 = arith.constant 0 : index
    %1 = vector.load %arg3[%c0_1, %c0_2] : memref<32x4xf32, #tpu.memory_space<vmem>>, vector<32x4xf32>
    %c0_3 = arith.constant 0 : index
    %c0_4 = arith.constant 0 : index
    %2 = vector.load %arg4[%c0_3, %c0_4] : memref<1x4xf32, #tpu.memory_space<vmem>>, vector<1x4xf32>
    %c0_5 = arith.constant 0 : index
    %c0_6 = arith.constant 0 : index
    %3 = vector.load %arg5[%c0_5, %c0_6] : memref<32x4xf32, #tpu.memory_space<vmem>>, vector<32x4xf32>
    %c0_7 = arith.constant 0 : index
    %c0_8 = arith.constant 0 : index
    %4 = vector.load %arg6[%c0_7, %c0_8] : memref<4x4xf32, #tpu.memory_space<vmem>>, vector<4x4xf32>
    %c0_9 = arith.constant 0 : index
    %c0_10 = arith.constant 0 : index
    %5 = vector.load %arg7[%c0_9, %c0_10] : memref<1x4xf32, #tpu.memory_space<vmem>>, vector<1x4xf32>
    %c0_11 = arith.constant 0 : index
    %c0_12 = arith.constant 0 : index
    %6 = vector.load %arg8[%c0_11, %c0_12] : memref<1x4xf32, #tpu.memory_space<vmem>>, vector<1x4xf32>
    %cst = arith.constant 0.000000e+00 : f32
    %7 = vector.broadcast %cst : f32 to vector<8x36xf32>
    %c0_13 = arith.constant 0 : index
    %c0_14 = arith.constant 0 : index
    %8 = vector.load %arg11[%c0_13, %c0_14] : memref<8x36xf32, #tpu.memory_space<vmem>>, vector<8x36xf32>
    tpu.vector_store %arg11[%c0_13, %c0_14], %7 {strides = array<i32>} : memref<8x36xf32, #tpu.memory_space<vmem>>, vector<8x36xf32>,
    %cst_15 = arith.constant 0.000000e+00 : f32
    %9 = vector.broadcast %cst_15 : f32 to vector<8x32xf32>
    %c0_16 = arith.constant 0 : index
    %c0_17 = arith.constant 0 : index
    %10 = vector.load %arg12[%c0_16, %c0_17] : memref<8x32xf32, #tpu.memory_space<vmem>>, vector<8x32xf32>
    tpu.vector_store %arg12[%c0_16, %c0_17], %9 {strides = array<i32>} : memref<8x32xf32, #tpu.memory_space<vmem>>, vector<8x32xf32>,
    %cst_18 = arith.constant 0.000000e+00 : f32
    %11 = vector.broadcast %cst_18 : f32 to vector<8x4xf32>
    %c0_19 = arith.constant 0 : index
    %c0_20 = arith.constant 0 : index
    %12 = vector.load %arg13[%c0_19, %c0_20] : memref<8x4xf32, #tpu.memory_space<vmem>>, vector<8x4xf32>
    tpu.vector_store %arg13[%c0_19, %c0_20], %11 {strides = array<i32>} : memref<8x4xf32, #tpu.memory_space<vmem>>, vector<8x4xf32>,
    %cst_21 = arith.constant -1.000000e+00 : f32
    %13 = vector.broadcast %cst_21 : f32 to vector<8x4xf32>
    %c0_22 = arith.constant 0 : index
    %c0_23 = arith.constant 0 : index
    %14 = vector.load %arg14[%c0_22, %c0_23] : memref<8x4xf32, #tpu.memory_space<vmem>>, vector<8x4xf32>
    tpu.vector_store %arg14[%c0_22, %c0_23], %13 {strides = array<i32>} : memref<8x4xf32, #tpu.memory_space<vmem>>, vector<8x4xf32>,
    %cst_24 = arith.constant 0.000000e+00 : f32
    %15 = vector.broadcast %cst_24 : f32 to vector<8x4xf32>
    %c0_i32 = arith.constant 0 : i32
    %c0_25 = arith.constant 0 : index
    %c0_26 = arith.constant 0 : index
    %16 = vector.load %arg11[%c0_25, %c0_26] : memref<8x36xf32, #tpu.memory_space<vmem>>, vector<8x36xf32>
    %17 = arith.index_cast %c0_i32 : i32 to index
    %c0_27 = arith.constant 0 : index
    %c0_28 = arith.constant 0 : index
    %18 = vector.load %arg0[%17, %c0_27, %c0_28] : memref<8x8x128xf32, #tpu.memory_space<vmem>>, vector<1x8x128xf32>
    %19 = vector.shape_cast %18 : vector<1x8x128xf32> to vector<8x128xf32>
    %cst_29 = arith.constant dense<0.000000e+00> : vector<8x128xf32>
    %20 = tpu.matmul %16, %0, %cst_29 {dimension_numbers = #tpu.dot_dimension_numbers<[1], [0], [0], [1], [0, 0, 1, 1], [], []>} : vector<8x36xf32>, vector<36x128xf32>, vector<8x128xf32> -> vector<8x128xf32>
    %21 = arith.addf %19, %20 : vector<8x128xf32>
    %22 = arith.negf %21 : vector<8x128xf32>
    %23 = math.exp %22 : vector<8x128xf32>
    %cst_30 = arith.constant 1.000000e+00 : f32
    %24 = vector.broadcast %cst_30 : f32 to vector<8x128xf32>
    %25 = arith.addf %24, %23 : vector<8x128xf32>
    %26 = arith.divf %24, %25 : vector<8x128xf32>
    %27 = math.tanh %21 : vector<8x128xf32>
    %28 = vector.extract_strided_slice %26 {offsets = [0, 0], sizes = [8, 32], strides = [1, 1]} : vector<8x128xf32> to vector<8x32xf32>
    %29 = vector.extract_strided_slice %26 {offsets = [0, 32], sizes = [8, 32], strides = [1, 1]} : vector<8x128xf32> to vector<8x32xf32>
    %30 = vector.extract_strided_slice %26 {offsets = [0, 96], sizes = [8, 32], strides = [1, 1]} : vector<8x128xf32> to vector<8x32xf32>
    %31 = vector.extract_strided_slice %27 {offsets = [0, 64], sizes = [8, 32], strides = [1, 1]} : vector<8x128xf32> to vector<8x32xf32>
    %c0_31 = arith.constant 0 : index
    %c0_32 = arith.constant 0 : index
    %32 = vector.load %arg12[%c0_31, %c0_32] : memref<8x32xf32, #tpu.memory_space<vmem>>, vector<8x32xf32>
    %33 = arith.mulf %29, %32 : vector<8x32xf32>
    %34 = arith.mulf %28, %31 : vector<8x32xf32>
    %35 = arith.addf %33, %34 : vector<8x32xf32>
    %36 = math.tanh %35 : vector<8x32xf32>
    %37 = arith.mulf %30, %36 : vector<8x32xf32>
    %c0_33 = arith.constant 0 : index
    %c0_34 = arith.constant 0 : index
    %38 = vector.load %arg12[%c0_33, %c0_34] : memref<8x32xf32, #tpu.memory_space<vmem>>, vector<8x32xf32>
    tpu.vector_store %arg12[%c0_33, %c0_34], %35 {strides = array<i32>} : memref<8x32xf32, #tpu.memory_space<vmem>>, vector<8x32xf32>,
    %cst_35 = arith.constant dense<0.000000e+00> : vector<8x4xf32>
    %39 = tpu.matmul %37, %1, %cst_35 {dimension_numbers = #tpu.dot_dimension_numbers<[1], [0], [0], [1], [0, 0, 1, 1], [], []>} : vector<8x32xf32>, vector<32x4xf32>, vector<8x4xf32> -> vector<8x4xf32>
    %40 = vector.broadcast %2 : vector<1x4xf32> to vector<8x4xf32>
    %41 = arith.addf %39, %40 : vector<8x4xf32>
    %42 = arith.negf %41 : vector<8x4xf32>
    %43 = math.exp %42 : vector<8x4xf32>
    %cst_36 = arith.constant 1.000000e+00 : f32
    %44 = vector.broadcast %cst_36 : f32 to vector<8x4xf32>
    %45 = arith.addf %44, %43 : vector<8x4xf32>
    %46 = arith.divf %44, %45 : vector<8x4xf32>
    %47 = arith.sitofp %c0_i32 : i32 to f32
    %cst_37 = arith.constant dense<0.000000e+00> : vector<8x4xf32>
    %48 = tpu.matmul %37, %3, %cst_37 {dimension_numbers = #tpu.dot_dimension_numbers<[1], [0], [0], [1], [0, 0, 1, 1], [], []>} : vector<8x32xf32>, vector<32x4xf32>, vector<8x4xf32> -> vector<8x4xf32>
    %cst_38 = arith.constant dense<0.000000e+00> : vector<8x4xf32>
    %49 = tpu.matmul %46, %4, %cst_38 {dimension_numbers = #tpu.dot_dimension_numbers<[1], [0], [0], [1], [0, 0, 1, 1], [], []>} : vector<8x4xf32>, vector<4x4xf32>, vector<8x4xf32> -> vector<8x4xf32>
    %50 = arith.addf %48, %49 : vector<8x4xf32>
    %51 = vector.broadcast %47 : f32 to vector<1x4xf32>
    %52 = arith.mulf %51, %5 : vector<1x4xf32>
    %53 = vector.broadcast %52 : vector<1x4xf32> to vector<8x4xf32>
    %54 = arith.addf %50, %53 : vector<8x4xf32>
    %55 = vector.broadcast %6 : vector<1x4xf32> to vector<8x4xf32>
    %56 = arith.addf %54, %55 : vector<8x4xf32>
    %57 = arith.negf %56 : vector<8x4xf32>
    %58 = math.exp %57 : vector<8x4xf32>
    %cst_39 = arith.constant 1.000000e+00 : f32
    %59 = vector.broadcast %cst_39 : f32 to vector<8x4xf32>
    %60 = arith.addf %59, %58 : vector<8x4xf32>
    %61 = arith.divf %59, %60 : vector<8x4xf32>
    %cst_40 = arith.constant 0.788927912 : f32
    %62 = vector.broadcast %cst_40 : f32 to vector<8x4xf32>
    %63 = arith.mulf %62, %61 : vector<8x4xf32>
    %cst_41 = arith.constant 0.010553604 : f32
    %64 = vector.broadcast %cst_41 : f32 to vector<8x4xf32>
    %65 = arith.addf %63, %64 : vector<8x4xf32>
    %66 = arith.index_cast %c0_i32 : i32 to index
    %c0_42 = arith.constant 0 : index
    %c0_43 = arith.constant 0 : index
    %67 = vector.load %arg1[%66, %c0_42, %c0_43] : memref<8x8x4xf32, #tpu.memory_space<vmem>>, vector<1x8x4xf32>
    %68 = vector.shape_cast %67 : vector<1x8x4xf32> to vector<8x4xf32>
    %69 = arith.cmpf olt, %68, %65 : vector<8x4xf32>
    %70 = vector.extract_strided_slice %16 {offsets = [0, 32], sizes = [8, 4], strides = [1, 1]} : vector<8x36xf32> to vector<8x4xf32>
    %c0_44 = arith.constant 0 : index
    %c0_45 = arith.constant 0 : index
    %71 = vector.load %arg13[%c0_44, %c0_45] : memref<8x4xf32, #tpu.memory_space<vmem>>, vector<8x4xf32>
    %c0_46 = arith.constant 0 : index
    %c0_47 = arith.constant 0 : index
    %72 = vector.load %arg14[%c0_46, %c0_47] : memref<8x4xf32, #tpu.memory_space<vmem>>, vector<8x4xf32>
    %cst_48 = arith.constant 0.000000e+00 : f32
    %73 = vector.broadcast %cst_48 : f32 to vector<8x4xf32>
    %74 = arith.cmpf oeq, %71, %73 : vector<8x4xf32>
    %75 = arith.andi %69, %74 : vector<8x4xi1>
    %76 = arith.select %75, %46, %71 : vector<8x4xi1>, vector<8x4xf32>
    %c0_49 = arith.constant 0 : index
    %c0_50 = arith.constant 0 : index
    %77 = vector.load %arg13[%c0_49, %c0_50] : memref<8x4xf32, #tpu.memory_space<vmem>>, vector<8x4xf32>
    tpu.vector_store %arg13[%c0_49, %c0_50], %76 {strides = array<i32>} : memref<8x4xf32, #tpu.memory_space<vmem>>, vector<8x4xf32>,
    %cst_51 = arith.constant 0.000000e+00 : f32
    %78 = vector.broadcast %cst_51 : f32 to vector<8x4xf32>
    %79 = arith.cmpf oeq, %70, %78 : vector<8x4xf32>
    %80 = arith.andi %69, %79 : vector<8x4xi1>
    %cst_52 = arith.constant 1.000000e+00 : f32
    %81 = vector.broadcast %cst_52 : f32 to vector<8x4xf32>
    %82 = arith.select %80, %81, %70 : vector<8x4xi1>, vector<8x4xf32>
    %cst_53 = arith.constant -1.000000e+00 : f32
    %83 = vector.broadcast %cst_53 : f32 to vector<8x4xf32>
    %84 = arith.cmpf oeq, %72, %83 : vector<8x4xf32>
    %85 = arith.andi %84, %69 : vector<8x4xi1>
    %86 = vector.broadcast %47 : f32 to vector<8x4xf32>
    %87 = arith.select %85, %86, %72 : vector<8x4xi1>, vector<8x4xf32>
    %c0_54 = arith.constant 0 : index
    %c0_55 = arith.constant 0 : index
    %88 = vector.load %arg14[%c0_54, %c0_55] : memref<8x4xf32, #tpu.memory_space<vmem>>, vector<8x4xf32>
    tpu.vector_store %arg14[%c0_54, %c0_55], %87 {strides = array<i32>} : memref<8x4xf32, #tpu.memory_space<vmem>>, vector<8x4xf32>,
    %c0_56 = arith.constant 0 : index
    %c0_57 = arith.constant 0 : index
    %89 = vector.load %arg11[%c0_56, %c0_57] : memref<8x36xf32, #tpu.memory_space<vmem>>, vector<8x32xf32>
    tpu.vector_store %arg11[%c0_56, %c0_57], %37 {strides = array<i32>} : memref<8x36xf32, #tpu.memory_space<vmem>>, vector<8x32xf32>,
    %c0_58 = arith.constant 0 : index
    %c32 = arith.constant 32 : index
    %90 = vector.load %arg11[%c0_58, %c32] : memref<8x36xf32, #tpu.memory_space<vmem>>, vector<8x4xf32>
    tpu.vector_store %arg11[%c0_58, %c32], %82 {strides = array<i32>} : memref<8x36xf32, #tpu.memory_space<vmem>>, vector<8x4xf32>,
    %c1_i32 = arith.constant 1 : i32
    %c0_59 = arith.constant 0 : index
    %c0_60 = arith.constant 0 : index
    %91 = vector.load %arg11[%c0_59, %c0_60] : memref<8x36xf32, #tpu.memory_space<vmem>>, vector<8x36xf32>
    %92 = arith.index_cast %c1_i32 : i32 to index
    %c0_61 = arith.constant 0 : index
    %c0_62 = arith.constant 0 : index
    %93 = vector.load %arg0[%92, %c0_61, %c0_62] : memref<8x8x128xf32, #tpu.memory_space<vmem>>, vector<1x8x128xf32>
    %94 = vector.shape_cast %93 : vector<1x8x128xf32> to vector<8x128xf32>
    %cst_63 = arith.constant dense<0.000000e+00> : vector<8x128xf32>
    %95 = tpu.matmul %91, %0, %cst_63 {dimension_numbers = #tpu.dot_dimension_numbers<[1], [0], [0], [1], [0, 0, 1, 1], [], []>} : vector<8x36xf32>, vector<36x128xf32>, vector<8x128xf32> -> vector<8x128xf32>
    %96 = arith.addf %94, %95 : vector<8x128xf32>
    %97 = arith.negf %96 : vector<8x128xf32>
    %98 = math.exp %97 : vector<8x128xf32>
    %cst_64 = arith.constant 1.000000e+00 : f32
    %99 = vector.broadcast %cst_64 : f32 to vector<8x128xf32>
    %100 = arith.addf %99, %98 : vector<8x128xf32>
    %101 = arith.divf %99, %100 : vector<8x128xf32>
    %102 = math.tanh %96 : vector<8x128xf32>
    %103 = vector.extract_strided_slice %101 {offsets = [0, 0], sizes = [8, 32], strides = [1, 1]} : vector<8x128xf32> to vector<8x32xf32>
    %104 = vector.extract_strided_slice %101 {offsets = [0, 32], sizes = [8, 32], strides = [1, 1]} : vector<8x128xf32> to vector<8x32xf32>
    %105 = vector.extract_strided_slice %101 {offsets = [0, 96], sizes = [8, 32], strides = [1, 1]} : vector<8x128xf32> to vector<8x32xf32>
    %106 = vector.extract_strided_slice %102 {offsets = [0, 64], sizes = [8, 32], strides = [1, 1]} : vector<8x128xf32> to vector<8x32xf32>
    %c0_65 = arith.constant 0 : index
    %c0_66 = arith.constant 0 : index
    %107 = vector.load %arg12[%c0_65, %c0_66] : memref<8x32xf32, #tpu.memory_space<vmem>>, vector<8x32xf32>
    %108 = arith.mulf %104, %107 : vector<8x32xf32>
    %109 = arith.mulf %103, %106 : vector<8x32xf32>
    %110 = arith.addf %108, %109 : vector<8x32xf32>
    %111 = math.tanh %110 : vector<8x32xf32>
    %112 = arith.mulf %105, %111 : vector<8x32xf32>
    %c0_67 = arith.constant 0 : index
    %c0_68 = arith.constant 0 : index
    %113 = vector.load %arg12[%c0_67, %c0_68] : memref<8x32xf32, #tpu.memory_space<vmem>>, vector<8x32xf32>
    tpu.vector_store %arg12[%c0_67, %c0_68], %110 {strides = array<i32>} : memref<8x32xf32, #tpu.memory_space<vmem>>, vector<8x32xf32>,
    %cst_69 = arith.constant dense<0.000000e+00> : vector<8x4xf32>
    %114 = tpu.matmul %112, %1, %cst_69 {dimension_numbers = #tpu.dot_dimension_numbers<[1], [0], [0], [1], [0, 0, 1, 1], [], []>} : vector<8x32xf32>, vector<32x4xf32>, vector<8x4xf32> -> vector<8x4xf32>
    %115 = vector.broadcast %2 : vector<1x4xf32> to vector<8x4xf32>
    %116 = arith.addf %114, %115 : vector<8x4xf32>
    %117 = arith.negf %116 : vector<8x4xf32>
    %118 = math.exp %117 : vector<8x4xf32>
    %cst_70 = arith.constant 1.000000e+00 : f32
    %119 = vector.broadcast %cst_70 : f32 to vector<8x4xf32>
    %120 = arith.addf %119, %118 : vector<8x4xf32>
    %121 = arith.divf %119, %120 : vector<8x4xf32>
    %122 = arith.sitofp %c1_i32 : i32 to f32
    %cst_71 = arith.constant dense<0.000000e+00> : vector<8x4xf32>
    %123 = tpu.matmul %112, %3, %cst_71 {dimension_numbers = #tpu.dot_dimension_numbers<[1], [0], [0], [1], [0, 0, 1, 1], [], []>} : vector<8x32xf32>, vector<32x4xf32>, vector<8x4xf32> -> vector<8x4xf32>
    %cst_72 = arith.constant dense<0.000000e+00> : vector<8x4xf32>
    %124 = tpu.matmul %121, %4, %cst_72 {dimension_numbers = #tpu.dot_dimension_numbers<[1], [0], [0], [1], [0, 0, 1, 1], [], []>} : vector<8x4xf32>, vector<4x4xf32>, vector<8x4xf32> -> vector<8x4xf32>
    %125 = arith.addf %123, %124 : vector<8x4xf32>
    %126 = vector.broadcast %122 : f32 to vector<1x4xf32>
    %127 = arith.mulf %126, %5 : vector<1x4xf32>
    %128 = vector.broadcast %127 : vector<1x4xf32> to vector<8x4xf32>
    %129 = arith.addf %125, %128 : vector<8x4xf32>
    %130 = vector.broadcast %6 : vector<1x4xf32> to vector<8x4xf32>
    %131 = arith.addf %129, %130 : vector<8x4xf32>
    %132 = arith.negf %131 : vector<8x4xf32>
    %133 = math.exp %132 : vector<8x4xf32>
    %cst_73 = arith.constant 1.000000e+00 : f32
    %134 = vector.broadcast %cst_73 : f32 to vector<8x4xf32>
    %135 = arith.addf %134, %133 : vector<8x4xf32>
    %136 = arith.divf %134, %135 : vector<8x4xf32>
    %cst_74 = arith.constant 0.788927912 : f32
    %137 = vector.broadcast %cst_74 : f32 to vector<8x4xf32>
    %138 = arith.mulf %137, %136 : vector<8x4xf32>
    %cst_75 = arith.constant 0.010553604 : f32
    %139 = vector.broadcast %cst_75 : f32 to vector<8x4xf32>
    %140 = arith.addf %138, %139 : vector<8x4xf32>
    %141 = arith.index_cast %c1_i32 : i32 to index
    %c0_76 = arith.constant 0 : index
    %c0_77 = arith.constant 0 : index
    %142 = vector.load %arg1[%141, %c0_76, %c0_77] : memref<8x8x4xf32, #tpu.memory_space<vmem>>, vector<1x8x4xf32>
    %143 = vector.shape_cast %142 : vector<1x8x4xf32> to vector<8x4xf32>
    %144 = arith.cmpf olt, %143, %140 : vector<8x4xf32>
    %145 = vector.extract_strided_slice %91 {offsets = [0, 32], sizes = [8, 4], strides = [1, 1]} : vector<8x36xf32> to vector<8x4xf32>
    %c0_78 = arith.constant 0 : index
    %c0_79 = arith.constant 0 : index
    %146 = vector.load %arg13[%c0_78, %c0_79] : memref<8x4xf32, #tpu.memory_space<vmem>>, vector<8x4xf32>
    %c0_80 = arith.constant 0 : index
    %c0_81 = arith.constant 0 : index
    %147 = vector.load %arg14[%c0_80, %c0_81] : memref<8x4xf32, #tpu.memory_space<vmem>>, vector<8x4xf32>
    %cst_82 = arith.constant 0.000000e+00 : f32
    %148 = vector.broadcast %cst_82 : f32 to vector<8x4xf32>
    %149 = arith.cmpf oeq, %146, %148 : vector<8x4xf32>
    %150 = arith.andi %144, %149 : vector<8x4xi1>
    %151 = arith.select %150, %121, %146 : vector<8x4xi1>, vector<8x4xf32>
    %c0_83 = arith.constant 0 : index
    %c0_84 = arith.constant 0 : index
    %152 = vector.load %arg13[%c0_83, %c0_84] : memref<8x4xf32, #tpu.memory_space<vmem>>, vector<8x4xf32>
    tpu.vector_store %arg13[%c0_83, %c0_84], %151 {strides = array<i32>} : memref<8x4xf32, #tpu.memory_space<vmem>>, vector<8x4xf32>,
    %cst_85 = arith.constant 0.000000e+00 : f32
    %153 = vector.broadcast %cst_85 : f32 to vector<8x4xf32>
    %154 = arith.cmpf oeq, %145, %153 : vector<8x4xf32>
    %155 = arith.andi %144, %154 : vector<8x4xi1>
    %cst_86 = arith.constant 1.000000e+00 : f32
    %156 = vector.broadcast %cst_86 : f32 to vector<8x4xf32>
    %157 = arith.select %155, %156, %145 : vector<8x4xi1>, vector<8x4xf32>
    %cst_87 = arith.constant -1.000000e+00 : f32
    %158 = vector.broadcast %cst_87 : f32 to vector<8x4xf32>
    %159 = arith.cmpf oeq, %147, %158 : vector<8x4xf32>
    %160 = arith.andi %159, %144 : vector<8x4xi1>
    %161 = vector.broadcast %122 : f32 to vector<8x4xf32>
    %162 = arith.select %160, %161, %147 : vector<8x4xi1>, vector<8x4xf32>
    %c0_88 = arith.constant 0 : index
    %c0_89 = arith.constant 0 : index
    %163 = vector.load %arg14[%c0_88, %c0_89] : memref<8x4xf32, #tpu.memory_space<vmem>>, vector<8x4xf32>
    tpu.vector_store %arg14[%c0_88, %c0_89], %162 {strides = array<i32>} : memref<8x4xf32, #tpu.memory_space<vmem>>, vector<8x4xf32>,
    %c0_90 = arith.constant 0 : index
    %c0_91 = arith.constant 0 : index
    %164 = vector.load %arg11[%c0_90, %c0_91] : memref<8x36xf32, #tpu.memory_space<vmem>>, vector<8x32xf32>
    tpu.vector_store %arg11[%c0_90, %c0_91], %112 {strides = array<i32>} : memref<8x36xf32, #tpu.memory_space<vmem>>, vector<8x32xf32>,
    %c0_92 = arith.constant 0 : index
    %c32_93 = arith.constant 32 : index
    %165 = vector.load %arg11[%c0_92, %c32_93] : memref<8x36xf32, #tpu.memory_space<vmem>>, vector<8x4xf32>
    tpu.vector_store %arg11[%c0_92, %c32_93], %157 {strides = array<i32>} : memref<8x36xf32, #tpu.memory_space<vmem>>, vector<8x4xf32>,
    %c2_i32 = arith.constant 2 : i32
    %c0_94 = arith.constant 0 : index
    %c0_95 = arith.constant 0 : index
    %166 = vector.load %arg11[%c0_94, %c0_95] : memref<8x36xf32, #tpu.memory_space<vmem>>, vector<8x36xf32>
    %167 = arith.index_cast %c2_i32 : i32 to index
    %c0_96 = arith.constant 0 : index
    %c0_97 = arith.constant 0 : index
    %168 = vector.load %arg0[%167, %c0_96, %c0_97] : memref<8x8x128xf32, #tpu.memory_space<vmem>>, vector<1x8x128xf32>
    %169 = vector.shape_cast %168 : vector<1x8x128xf32> to vector<8x128xf32>
    %cst_98 = arith.constant dense<0.000000e+00> : vector<8x128xf32>
    %170 = tpu.matmul %166, %0, %cst_98 {dimension_numbers = #tpu.dot_dimension_numbers<[1], [0], [0], [1], [0, 0, 1, 1], [], []>} : vector<8x36xf32>, vector<36x128xf32>, vector<8x128xf32> -> vector<8x128xf32>
    %171 = arith.addf %169, %170 : vector<8x128xf32>
    %172 = arith.negf %171 : vector<8x128xf32>
    %173 = math.exp %172 : vector<8x128xf32>
    %cst_99 = arith.constant 1.000000e+00 : f32
    %174 = vector.broadcast %cst_99 : f32 to vector<8x128xf32>
    %175 = arith.addf %174, %173 : vector<8x128xf32>
    %176 = arith.divf %174, %175 : vector<8x128xf32>
    %177 = math.tanh %171 : vector<8x128xf32>
    %178 = vector.extract_strided_slice %176 {offsets = [0, 0], sizes = [8, 32], strides = [1, 1]} : vector<8x128xf32> to vector<8x32xf32>
    %179 = vector.extract_strided_slice %176 {offsets = [0, 32], sizes = [8, 32], strides = [1, 1]} : vector<8x128xf32> to vector<8x32xf32>
    %180 = vector.extract_strided_slice %176 {offsets = [0, 96], sizes = [8, 32], strides = [1, 1]} : vector<8x128xf32> to vector<8x32xf32>
    %181 = vector.extract_strided_slice %177 {offsets = [0, 64], sizes = [8, 32], strides = [1, 1]} : vector<8x128xf32> to vector<8x32xf32>
    %c0_100 = arith.constant 0 : index
    %c0_101 = arith.constant 0 : index
    %182 = vector.load %arg12[%c0_100, %c0_101] : memref<8x32xf32, #tpu.memory_space<vmem>>, vector<8x32xf32>
    %183 = arith.mulf %179, %182 : vector<8x32xf32>
    %184 = arith.mulf %178, %181 : vector<8x32xf32>
    %185 = arith.addf %183, %184 : vector<8x32xf32>
    %186 = math.tanh %185 : vector<8x32xf32>
    %187 = arith.mulf %180, %186 : vector<8x32xf32>
    %c0_102 = arith.constant 0 : index
    %c0_103 = arith.constant 0 : index
    %188 = vector.load %arg12[%c0_102, %c0_103] : memref<8x32xf32, #tpu.memory_space<vmem>>, vector<8x32xf32>
    tpu.vector_store %arg12[%c0_102, %c0_103], %185 {strides = array<i32>} : memref<8x32xf32, #tpu.memory_space<vmem>>, vector<8x32xf32>,
    %cst_104 = arith.constant dense<0.000000e+00> : vector<8x4xf32>
    %189 = tpu.matmul %187, %1, %cst_104 {dimension_numbers = #tpu.dot_dimension_numbers<[1], [0], [0], [1], [0, 0, 1, 1], [], []>} : vector<8x32xf32>, vector<32x4xf32>, vector<8x4xf32> -> vector<8x4xf32>
    %190 = vector.broadcast %2 : vector<1x4xf32> to vector<8x4xf32>
    %191 = arith.addf %189, %190 : vector<8x4xf32>
    %192 = arith.negf %191 : vector<8x4xf32>
    %193 = math.exp %192 : vector<8x4xf32>
    %cst_105 = arith.constant 1.000000e+00 : f32
    %194 = vector.broadcast %cst_105 : f32 to vector<8x4xf32>
    %195 = arith.addf %194, %193 : vector<8x4xf32>
    %196 = arith.divf %194, %195 : vector<8x4xf32>
    %197 = arith.sitofp %c2_i32 : i32 to f32
    %cst_106 = arith.constant dense<0.000000e+00> : vector<8x4xf32>
    %198 = tpu.matmul %187, %3, %cst_106 {dimension_numbers = #tpu.dot_dimension_numbers<[1], [0], [0], [1], [0, 0, 1, 1], [], []>} : vector<8x32xf32>, vector<32x4xf32>, vector<8x4xf32> -> vector<8x4xf32>
    %cst_107 = arith.constant dense<0.000000e+00> : vector<8x4xf32>
    %199 = tpu.matmul %196, %4, %cst_107 {dimension_numbers = #tpu.dot_dimension_numbers<[1], [0], [0], [1], [0, 0, 1, 1], [], []>} : vector<8x4xf32>, vector<4x4xf32>, vector<8x4xf32> -> vector<8x4xf32>
    %200 = arith.addf %198, %199 : vector<8x4xf32>
    %201 = vector.broadcast %197 : f32 to vector<1x4xf32>
    %202 = arith.mulf %201, %5 : vector<1x4xf32>
    %203 = vector.broadcast %202 : vector<1x4xf32> to vector<8x4xf32>
    %204 = arith.addf %200, %203 : vector<8x4xf32>
    %205 = vector.broadcast %6 : vector<1x4xf32> to vector<8x4xf32>
    %206 = arith.addf %204, %205 : vector<8x4xf32>
    %207 = arith.negf %206 : vector<8x4xf32>
    %208 = math.exp %207 : vector<8x4xf32>
    %cst_108 = arith.constant 1.000000e+00 : f32
    %209 = vector.broadcast %cst_108 : f32 to vector<8x4xf32>
    %210 = arith.addf %209, %208 : vector<8x4xf32>
    %211 = arith.divf %209, %210 : vector<8x4xf32>
    %cst_109 = arith.constant 0.788927912 : f32
    %212 = vector.broadcast %cst_109 : f32 to vector<8x4xf32>
    %213 = arith.mulf %212, %211 : vector<8x4xf32>
    %cst_110 = arith.constant 0.010553604 : f32
    %214 = vector.broadcast %cst_110 : f32 to vector<8x4xf32>
    %215 = arith.addf %213, %214 : vector<8x4xf32>
    %216 = arith.index_cast %c2_i32 : i32 to index
    %c0_111 = arith.constant 0 : index
    %c0_112 = arith.constant 0 : index
    %217 = vector.load %arg1[%216, %c0_111, %c0_112] : memref<8x8x4xf32, #tpu.memory_space<vmem>>, vector<1x8x4xf32>
    %218 = vector.shape_cast %217 : vector<1x8x4xf32> to vector<8x4xf32>
    %219 = arith.cmpf olt, %218, %215 : vector<8x4xf32>
    %220 = vector.extract_strided_slice %166 {offsets = [0, 32], sizes = [8, 4], strides = [1, 1]} : vector<8x36xf32> to vector<8x4xf32>
    %c0_113 = arith.constant 0 : index
    %c0_114 = arith.constant 0 : index
    %221 = vector.load %arg13[%c0_113, %c0_114] : memref<8x4xf32, #tpu.memory_space<vmem>>, vector<8x4xf32>
    %c0_115 = arith.constant 0 : index
    %c0_116 = arith.constant 0 : index
    %222 = vector.load %arg14[%c0_115, %c0_116] : memref<8x4xf32, #tpu.memory_space<vmem>>, vector<8x4xf32>
    %cst_117 = arith.constant 0.000000e+00 : f32
    %223 = vector.broadcast %cst_117 : f32 to vector<8x4xf32>
    %224 = arith.cmpf oeq, %221, %223 : vector<8x4xf32>
    %225 = arith.andi %219, %224 : vector<8x4xi1>
    %226 = arith.select %225, %196, %221 : vector<8x4xi1>, vector<8x4xf32>
    %c0_118 = arith.constant 0 : index
    %c0_119 = arith.constant 0 : index
    %227 = vector.load %arg13[%c0_118, %c0_119] : memref<8x4xf32, #tpu.memory_space<vmem>>, vector<8x4xf32>
    tpu.vector_store %arg13[%c0_118, %c0_119], %226 {strides = array<i32>} : memref<8x4xf32, #tpu.memory_space<vmem>>, vector<8x4xf32>,
    %cst_120 = arith.constant 0.000000e+00 : f32
    %228 = vector.broadcast %cst_120 : f32 to vector<8x4xf32>
    %229 = arith.cmpf oeq, %220, %228 : vector<8x4xf32>
    %230 = arith.andi %219, %229 : vector<8x4xi1>
    %cst_121 = arith.constant 1.000000e+00 : f32
    %231 = vector.broadcast %cst_121 : f32 to vector<8x4xf32>
    %232 = arith.select %230, %231, %220 : vector<8x4xi1>, vector<8x4xf32>
    %cst_122 = arith.constant -1.000000e+00 : f32
    %233 = vector.broadcast %cst_122 : f32 to vector<8x4xf32>
    %234 = arith.cmpf oeq, %222, %233 : vector<8x4xf32>
    %235 = arith.andi %234, %219 : vector<8x4xi1>
    %236 = vector.broadcast %197 : f32 to vector<8x4xf32>
    %237 = arith.select %235, %236, %222 : vector<8x4xi1>, vector<8x4xf32>
    %c0_123 = arith.constant 0 : index
    %c0_124 = arith.constant 0 : index
    %238 = vector.load %arg14[%c0_123, %c0_124] : memref<8x4xf32, #tpu.memory_space<vmem>>, vector<8x4xf32>
    tpu.vector_store %arg14[%c0_123, %c0_124], %237 {strides = array<i32>} : memref<8x4xf32, #tpu.memory_space<vmem>>, vector<8x4xf32>,
    %c0_125 = arith.constant 0 : index
    %c0_126 = arith.constant 0 : index
    %239 = vector.load %arg11[%c0_125, %c0_126] : memref<8x36xf32, #tpu.memory_space<vmem>>, vector<8x32xf32>
    tpu.vector_store %arg11[%c0_125, %c0_126], %187 {strides = array<i32>} : memref<8x36xf32, #tpu.memory_space<vmem>>, vector<8x32xf32>,
    %c0_127 = arith.constant 0 : index
    %c32_128 = arith.constant 32 : index
    %240 = vector.load %arg11[%c0_127, %c32_128] : memref<8x36xf32, #tpu.memory_space<vmem>>, vector<8x4xf32>
    tpu.vector_store %arg11[%c0_127, %c32_128], %232 {strides = array<i32>} : memref<8x36xf32, #tpu.memory_space<vmem>>, vector<8x4xf32>,
    %c3_i32 = arith.constant 3 : i32
    %c0_129 = arith.constant 0 : index
    %c0_130 = arith.constant 0 : index
    %241 = vector.load %arg11[%c0_129, %c0_130] : memref<8x36xf32, #tpu.memory_space<vmem>>, vector<8x36xf32>
    %242 = arith.index_cast %c3_i32 : i32 to index
    %c0_131 = arith.constant 0 : index
    %c0_132 = arith.constant 0 : index
    %243 = vector.load %arg0[%242, %c0_131, %c0_132] : memref<8x8x128xf32, #tpu.memory_space<vmem>>, vector<1x8x128xf32>
    %244 = vector.shape_cast %243 : vector<1x8x128xf32> to vector<8x128xf32>
    %cst_133 = arith.constant dense<0.000000e+00> : vector<8x128xf32>
    %245 = tpu.matmul %241, %0, %cst_133 {dimension_numbers = #tpu.dot_dimension_numbers<[1], [0], [0], [1], [0, 0, 1, 1], [], []>} : vector<8x36xf32>, vector<36x128xf32>, vector<8x128xf32> -> vector<8x128xf32>
    %246 = arith.addf %244, %245 : vector<8x128xf32>
    %247 = arith.negf %246 : vector<8x128xf32>
    %248 = math.exp %247 : vector<8x128xf32>
    %cst_134 = arith.constant 1.000000e+00 : f32
    %249 = vector.broadcast %cst_134 : f32 to vector<8x128xf32>
    %250 = arith.addf %249, %248 : vector<8x128xf32>
    %251 = arith.divf %249, %250 : vector<8x128xf32>
    %252 = math.tanh %246 : vector<8x128xf32>
    %253 = vector.extract_strided_slice %251 {offsets = [0, 0], sizes = [8, 32], strides = [1, 1]} : vector<8x128xf32> to vector<8x32xf32>
    %254 = vector.extract_strided_slice %251 {offsets = [0, 32], sizes = [8, 32], strides = [1, 1]} : vector<8x128xf32> to vector<8x32xf32>
    %255 = vector.extract_strided_slice %251 {offsets = [0, 96], sizes = [8, 32], strides = [1, 1]} : vector<8x128xf32> to vector<8x32xf32>
    %256 = vector.extract_strided_slice %252 {offsets = [0, 64], sizes = [8, 32], strides = [1, 1]} : vector<8x128xf32> to vector<8x32xf32>
    %c0_135 = arith.constant 0 : index
    %c0_136 = arith.constant 0 : index
    %257 = vector.load %arg12[%c0_135, %c0_136] : memref<8x32xf32, #tpu.memory_space<vmem>>, vector<8x32xf32>
    %258 = arith.mulf %254, %257 : vector<8x32xf32>
    %259 = arith.mulf %253, %256 : vector<8x32xf32>
    %260 = arith.addf %258, %259 : vector<8x32xf32>
    %261 = math.tanh %260 : vector<8x32xf32>
    %262 = arith.mulf %255, %261 : vector<8x32xf32>
    %c0_137 = arith.constant 0 : index
    %c0_138 = arith.constant 0 : index
    %263 = vector.load %arg12[%c0_137, %c0_138] : memref<8x32xf32, #tpu.memory_space<vmem>>, vector<8x32xf32>
    tpu.vector_store %arg12[%c0_137, %c0_138], %260 {strides = array<i32>} : memref<8x32xf32, #tpu.memory_space<vmem>>, vector<8x32xf32>,
    %cst_139 = arith.constant dense<0.000000e+00> : vector<8x4xf32>
    %264 = tpu.matmul %262, %1, %cst_139 {dimension_numbers = #tpu.dot_dimension_numbers<[1], [0], [0], [1], [0, 0, 1, 1], [], []>} : vector<8x32xf32>, vector<32x4xf32>, vector<8x4xf32> -> vector<8x4xf32>
    %265 = vector.broadcast %2 : vector<1x4xf32> to vector<8x4xf32>
    %266 = arith.addf %264, %265 : vector<8x4xf32>
    %267 = arith.negf %266 : vector<8x4xf32>
    %268 = math.exp %267 : vector<8x4xf32>
    %cst_140 = arith.constant 1.000000e+00 : f32
    %269 = vector.broadcast %cst_140 : f32 to vector<8x4xf32>
    %270 = arith.addf %269, %268 : vector<8x4xf32>
    %271 = arith.divf %269, %270 : vector<8x4xf32>
    %272 = arith.sitofp %c3_i32 : i32 to f32
    %cst_141 = arith.constant dense<0.000000e+00> : vector<8x4xf32>
    %273 = tpu.matmul %262, %3, %cst_141 {dimension_numbers = #tpu.dot_dimension_numbers<[1], [0], [0], [1], [0, 0, 1, 1], [], []>} : vector<8x32xf32>, vector<32x4xf32>, vector<8x4xf32> -> vector<8x4xf32>
    %cst_142 = arith.constant dense<0.000000e+00> : vector<8x4xf32>
    %274 = tpu.matmul %271, %4, %cst_142 {dimension_numbers = #tpu.dot_dimension_numbers<[1], [0], [0], [1], [0, 0, 1, 1], [], []>} : vector<8x4xf32>, vector<4x4xf32>, vector<8x4xf32> -> vector<8x4xf32>
    %275 = arith.addf %273, %274 : vector<8x4xf32>
    %276 = vector.broadcast %272 : f32 to vector<1x4xf32>
    %277 = arith.mulf %276, %5 : vector<1x4xf32>
    %278 = vector.broadcast %277 : vector<1x4xf32> to vector<8x4xf32>
    %279 = arith.addf %275, %278 : vector<8x4xf32>
    %280 = vector.broadcast %6 : vector<1x4xf32> to vector<8x4xf32>
    %281 = arith.addf %279, %280 : vector<8x4xf32>
    %282 = arith.negf %281 : vector<8x4xf32>
    %283 = math.exp %282 : vector<8x4xf32>
    %cst_143 = arith.constant 1.000000e+00 : f32
    %284 = vector.broadcast %cst_143 : f32 to vector<8x4xf32>
    %285 = arith.addf %284, %283 : vector<8x4xf32>
    %286 = arith.divf %284, %285 : vector<8x4xf32>
    %cst_144 = arith.constant 0.788927912 : f32
    %287 = vector.broadcast %cst_144 : f32 to vector<8x4xf32>
    %288 = arith.mulf %287, %286 : vector<8x4xf32>
    %cst_145 = arith.constant 0.010553604 : f32
    %289 = vector.broadcast %cst_145 : f32 to vector<8x4xf32>
    %290 = arith.addf %288, %289 : vector<8x4xf32>
    %291 = arith.index_cast %c3_i32 : i32 to index
    %c0_146 = arith.constant 0 : index
    %c0_147 = arith.constant 0 : index
    %292 = vector.load %arg1[%291, %c0_146, %c0_147] : memref<8x8x4xf32, #tpu.memory_space<vmem>>, vector<1x8x4xf32>
    %293 = vector.shape_cast %292 : vector<1x8x4xf32> to vector<8x4xf32>
    %294 = arith.cmpf olt, %293, %290 : vector<8x4xf32>
    %295 = vector.extract_strided_slice %241 {offsets = [0, 32], sizes = [8, 4], strides = [1, 1]} : vector<8x36xf32> to vector<8x4xf32>
    %c0_148 = arith.constant 0 : index
    %c0_149 = arith.constant 0 : index
    %296 = vector.load %arg13[%c0_148, %c0_149] : memref<8x4xf32, #tpu.memory_space<vmem>>, vector<8x4xf32>
    %c0_150 = arith.constant 0 : index
    %c0_151 = arith.constant 0 : index
    %297 = vector.load %arg14[%c0_150, %c0_151] : memref<8x4xf32, #tpu.memory_space<vmem>>, vector<8x4xf32>
    %cst_152 = arith.constant 0.000000e+00 : f32
    %298 = vector.broadcast %cst_152 : f32 to vector<8x4xf32>
    %299 = arith.cmpf oeq, %296, %298 : vector<8x4xf32>
    %300 = arith.andi %294, %299 : vector<8x4xi1>
    %301 = arith.select %300, %271, %296 : vector<8x4xi1>, vector<8x4xf32>
    %c0_153 = arith.constant 0 : index
    %c0_154 = arith.constant 0 : index
    %302 = vector.load %arg13[%c0_153, %c0_154] : memref<8x4xf32, #tpu.memory_space<vmem>>, vector<8x4xf32>
    tpu.vector_store %arg13[%c0_153, %c0_154], %301 {strides = array<i32>} : memref<8x4xf32, #tpu.memory_space<vmem>>, vector<8x4xf32>,
    %cst_155 = arith.constant 0.000000e+00 : f32
    %303 = vector.broadcast %cst_155 : f32 to vector<8x4xf32>
    %304 = arith.cmpf oeq, %295, %303 : vector<8x4xf32>
    %305 = arith.andi %294, %304 : vector<8x4xi1>
    %cst_156 = arith.constant 1.000000e+00 : f32
    %306 = vector.broadcast %cst_156 : f32 to vector<8x4xf32>
    %307 = arith.select %305, %306, %295 : vector<8x4xi1>, vector<8x4xf32>
    %cst_157 = arith.constant -1.000000e+00 : f32
    %308 = vector.broadcast %cst_157 : f32 to vector<8x4xf32>
    %309 = arith.cmpf oeq, %297, %308 : vector<8x4xf32>
    %310 = arith.andi %309, %294 : vector<8x4xi1>
    %311 = vector.broadcast %272 : f32 to vector<8x4xf32>
    %312 = arith.select %310, %311, %297 : vector<8x4xi1>, vector<8x4xf32>
    %c0_158 = arith.constant 0 : index
    %c0_159 = arith.constant 0 : index
    %313 = vector.load %arg14[%c0_158, %c0_159] : memref<8x4xf32, #tpu.memory_space<vmem>>, vector<8x4xf32>
    tpu.vector_store %arg14[%c0_158, %c0_159], %312 {strides = array<i32>} : memref<8x4xf32, #tpu.memory_space<vmem>>, vector<8x4xf32>,
    %c0_160 = arith.constant 0 : index
    %c0_161 = arith.constant 0 : index
    %314 = vector.load %arg11[%c0_160, %c0_161] : memref<8x36xf32, #tpu.memory_space<vmem>>, vector<8x32xf32>
    tpu.vector_store %arg11[%c0_160, %c0_161], %262 {strides = array<i32>} : memref<8x36xf32, #tpu.memory_space<vmem>>, vector<8x32xf32>,
    %c0_162 = arith.constant 0 : index
    %c32_163 = arith.constant 32 : index
    %315 = vector.load %arg11[%c0_162, %c32_163] : memref<8x36xf32, #tpu.memory_space<vmem>>, vector<8x4xf32>
    tpu.vector_store %arg11[%c0_162, %c32_163], %307 {strides = array<i32>} : memref<8x36xf32, #tpu.memory_space<vmem>>, vector<8x4xf32>,
    %c4_i32 = arith.constant 4 : i32
    %c0_164 = arith.constant 0 : index
    %c0_165 = arith.constant 0 : index
    %316 = vector.load %arg11[%c0_164, %c0_165] : memref<8x36xf32, #tpu.memory_space<vmem>>, vector<8x36xf32>
    %317 = arith.index_cast %c4_i32 : i32 to index
    %c0_166 = arith.constant 0 : index
    %c0_167 = arith.constant 0 : index
    %318 = vector.load %arg0[%317, %c0_166, %c0_167] : memref<8x8x128xf32, #tpu.memory_space<vmem>>, vector<1x8x128xf32>
    %319 = vector.shape_cast %318 : vector<1x8x128xf32> to vector<8x128xf32>
    %cst_168 = arith.constant dense<0.000000e+00> : vector<8x128xf32>
    %320 = tpu.matmul %316, %0, %cst_168 {dimension_numbers = #tpu.dot_dimension_numbers<[1], [0], [0], [1], [0, 0, 1, 1], [], []>} : vector<8x36xf32>, vector<36x128xf32>, vector<8x128xf32> -> vector<8x128xf32>
    %321 = arith.addf %319, %320 : vector<8x128xf32>
    %322 = arith.negf %321 : vector<8x128xf32>
    %323 = math.exp %322 : vector<8x128xf32>
    %cst_169 = arith.constant 1.000000e+00 : f32
    %324 = vector.broadcast %cst_169 : f32 to vector<8x128xf32>
    %325 = arith.addf %324, %323 : vector<8x128xf32>
    %326 = arith.divf %324, %325 : vector<8x128xf32>
    %327 = math.tanh %321 : vector<8x128xf32>
    %328 = vector.extract_strided_slice %326 {offsets = [0, 0], sizes = [8, 32], strides = [1, 1]} : vector<8x128xf32> to vector<8x32xf32>
    %329 = vector.extract_strided_slice %326 {offsets = [0, 32], sizes = [8, 32], strides = [1, 1]} : vector<8x128xf32> to vector<8x32xf32>
    %330 = vector.extract_strided_slice %326 {offsets = [0, 96], sizes = [8, 32], strides = [1, 1]} : vector<8x128xf32> to vector<8x32xf32>
    %331 = vector.extract_strided_slice %327 {offsets = [0, 64], sizes = [8, 32], strides = [1, 1]} : vector<8x128xf32> to vector<8x32xf32>
    %c0_170 = arith.constant 0 : index
    %c0_171 = arith.constant 0 : index
    %332 = vector.load %arg12[%c0_170, %c0_171] : memref<8x32xf32, #tpu.memory_space<vmem>>, vector<8x32xf32>
    %333 = arith.mulf %329, %332 : vector<8x32xf32>
    %334 = arith.mulf %328, %331 : vector<8x32xf32>
    %335 = arith.addf %333, %334 : vector<8x32xf32>
    %336 = math.tanh %335 : vector<8x32xf32>
    %337 = arith.mulf %330, %336 : vector<8x32xf32>
    %c0_172 = arith.constant 0 : index
    %c0_173 = arith.constant 0 : index
    %338 = vector.load %arg12[%c0_172, %c0_173] : memref<8x32xf32, #tpu.memory_space<vmem>>, vector<8x32xf32>
    tpu.vector_store %arg12[%c0_172, %c0_173], %335 {strides = array<i32>} : memref<8x32xf32, #tpu.memory_space<vmem>>, vector<8x32xf32>,
    %cst_174 = arith.constant dense<0.000000e+00> : vector<8x4xf32>
    %339 = tpu.matmul %337, %1, %cst_174 {dimension_numbers = #tpu.dot_dimension_numbers<[1], [0], [0], [1], [0, 0, 1, 1], [], []>} : vector<8x32xf32>, vector<32x4xf32>, vector<8x4xf32> -> vector<8x4xf32>
    %340 = vector.broadcast %2 : vector<1x4xf32> to vector<8x4xf32>
    %341 = arith.addf %339, %340 : vector<8x4xf32>
    %342 = arith.negf %341 : vector<8x4xf32>
    %343 = math.exp %342 : vector<8x4xf32>
    %cst_175 = arith.constant 1.000000e+00 : f32
    %344 = vector.broadcast %cst_175 : f32 to vector<8x4xf32>
    %345 = arith.addf %344, %343 : vector<8x4xf32>
    %346 = arith.divf %344, %345 : vector<8x4xf32>
    %347 = arith.sitofp %c4_i32 : i32 to f32
    %cst_176 = arith.constant dense<0.000000e+00> : vector<8x4xf32>
    %348 = tpu.matmul %337, %3, %cst_176 {dimension_numbers = #tpu.dot_dimension_numbers<[1], [0], [0], [1], [0, 0, 1, 1], [], []>} : vector<8x32xf32>, vector<32x4xf32>, vector<8x4xf32> -> vector<8x4xf32>
    %cst_177 = arith.constant dense<0.000000e+00> : vector<8x4xf32>
    %349 = tpu.matmul %346, %4, %cst_177 {dimension_numbers = #tpu.dot_dimension_numbers<[1], [0], [0], [1], [0, 0, 1, 1], [], []>} : vector<8x4xf32>, vector<4x4xf32>, vector<8x4xf32> -> vector<8x4xf32>
    %350 = arith.addf %348, %349 : vector<8x4xf32>
    %351 = vector.broadcast %347 : f32 to vector<1x4xf32>
    %352 = arith.mulf %351, %5 : vector<1x4xf32>
    %353 = vector.broadcast %352 : vector<1x4xf32> to vector<8x4xf32>
    %354 = arith.addf %350, %353 : vector<8x4xf32>
    %355 = vector.broadcast %6 : vector<1x4xf32> to vector<8x4xf32>
    %356 = arith.addf %354, %355 : vector<8x4xf32>
    %357 = arith.negf %356 : vector<8x4xf32>
    %358 = math.exp %357 : vector<8x4xf32>
    %cst_178 = arith.constant 1.000000e+00 : f32
    %359 = vector.broadcast %cst_178 : f32 to vector<8x4xf32>
    %360 = arith.addf %359, %358 : vector<8x4xf32>
    %361 = arith.divf %359, %360 : vector<8x4xf32>
    %cst_179 = arith.constant 0.788927912 : f32
    %362 = vector.broadcast %cst_179 : f32 to vector<8x4xf32>
    %363 = arith.mulf %362, %361 : vector<8x4xf32>
    %cst_180 = arith.constant 0.010553604 : f32
    %364 = vector.broadcast %cst_180 : f32 to vector<8x4xf32>
    %365 = arith.addf %363, %364 : vector<8x4xf32>
    %366 = arith.index_cast %c4_i32 : i32 to index
    %c0_181 = arith.constant 0 : index
    %c0_182 = arith.constant 0 : index
    %367 = vector.load %arg1[%366, %c0_181, %c0_182] : memref<8x8x4xf32, #tpu.memory_space<vmem>>, vector<1x8x4xf32>
    %368 = vector.shape_cast %367 : vector<1x8x4xf32> to vector<8x4xf32>
    %369 = arith.cmpf olt, %368, %365 : vector<8x4xf32>
    %370 = vector.extract_strided_slice %316 {offsets = [0, 32], sizes = [8, 4], strides = [1, 1]} : vector<8x36xf32> to vector<8x4xf32>
    %c0_183 = arith.constant 0 : index
    %c0_184 = arith.constant 0 : index
    %371 = vector.load %arg13[%c0_183, %c0_184] : memref<8x4xf32, #tpu.memory_space<vmem>>, vector<8x4xf32>
    %c0_185 = arith.constant 0 : index
    %c0_186 = arith.constant 0 : index
    %372 = vector.load %arg14[%c0_185, %c0_186] : memref<8x4xf32, #tpu.memory_space<vmem>>, vector<8x4xf32>
    %cst_187 = arith.constant 0.000000e+00 : f32
    %373 = vector.broadcast %cst_187 : f32 to vector<8x4xf32>
    %374 = arith.cmpf oeq, %371, %373 : vector<8x4xf32>
    %375 = arith.andi %369, %374 : vector<8x4xi1>
    %376 = arith.select %375, %346, %371 : vector<8x4xi1>, vector<8x4xf32>
    %c0_188 = arith.constant 0 : index
    %c0_189 = arith.constant 0 : index
    %377 = vector.load %arg13[%c0_188, %c0_189] : memref<8x4xf32, #tpu.memory_space<vmem>>, vector<8x4xf32>
    tpu.vector_store %arg13[%c0_188, %c0_189], %376 {strides = array<i32>} : memref<8x4xf32, #tpu.memory_space<vmem>>, vector<8x4xf32>,
    %cst_190 = arith.constant 0.000000e+00 : f32
    %378 = vector.broadcast %cst_190 : f32 to vector<8x4xf32>
    %379 = arith.cmpf oeq, %370, %378 : vector<8x4xf32>
    %380 = arith.andi %369, %379 : vector<8x4xi1>
    %cst_191 = arith.constant 1.000000e+00 : f32
    %381 = vector.broadcast %cst_191 : f32 to vector<8x4xf32>
    %382 = arith.select %380, %381, %370 : vector<8x4xi1>, vector<8x4xf32>
    %cst_192 = arith.constant -1.000000e+00 : f32
    %383 = vector.broadcast %cst_192 : f32 to vector<8x4xf32>
    %384 = arith.cmpf oeq, %372, %383 : vector<8x4xf32>
    %385 = arith.andi %384, %369 : vector<8x4xi1>
    %386 = vector.broadcast %347 : f32 to vector<8x4xf32>
    %387 = arith.select %385, %386, %372 : vector<8x4xi1>, vector<8x4xf32>
    %c0_193 = arith.constant 0 : index
    %c0_194 = arith.constant 0 : index
    %388 = vector.load %arg14[%c0_193, %c0_194] : memref<8x4xf32, #tpu.memory_space<vmem>>, vector<8x4xf32>
    tpu.vector_store %arg14[%c0_193, %c0_194], %387 {strides = array<i32>} : memref<8x4xf32, #tpu.memory_space<vmem>>, vector<8x4xf32>,
    %c0_195 = arith.constant 0 : index
    %c0_196 = arith.constant 0 : index
    %389 = vector.load %arg11[%c0_195, %c0_196] : memref<8x36xf32, #tpu.memory_space<vmem>>, vector<8x32xf32>
    tpu.vector_store %arg11[%c0_195, %c0_196], %337 {strides = array<i32>} : memref<8x36xf32, #tpu.memory_space<vmem>>, vector<8x32xf32>,
    %c0_197 = arith.constant 0 : index
    %c32_198 = arith.constant 32 : index
    %390 = vector.load %arg11[%c0_197, %c32_198] : memref<8x36xf32, #tpu.memory_space<vmem>>, vector<8x4xf32>
    tpu.vector_store %arg11[%c0_197, %c32_198], %382 {strides = array<i32>} : memref<8x36xf32, #tpu.memory_space<vmem>>, vector<8x4xf32>,
    %c5_i32 = arith.constant 5 : i32
    %c0_199 = arith.constant 0 : index
    %c0_200 = arith.constant 0 : index
    %391 = vector.load %arg11[%c0_199, %c0_200] : memref<8x36xf32, #tpu.memory_space<vmem>>, vector<8x36xf32>
    %392 = arith.index_cast %c5_i32 : i32 to index
    %c0_201 = arith.constant 0 : index
    %c0_202 = arith.constant 0 : index
    %393 = vector.load %arg0[%392, %c0_201, %c0_202] : memref<8x8x128xf32, #tpu.memory_space<vmem>>, vector<1x8x128xf32>
    %394 = vector.shape_cast %393 : vector<1x8x128xf32> to vector<8x128xf32>
    %cst_203 = arith.constant dense<0.000000e+00> : vector<8x128xf32>
    %395 = tpu.matmul %391, %0, %cst_203 {dimension_numbers = #tpu.dot_dimension_numbers<[1], [0], [0], [1], [0, 0, 1, 1], [], []>} : vector<8x36xf32>, vector<36x128xf32>, vector<8x128xf32> -> vector<8x128xf32>
    %396 = arith.addf %394, %395 : vector<8x128xf32>
    %397 = arith.negf %396 : vector<8x128xf32>
    %398 = math.exp %397 : vector<8x128xf32>
    %cst_204 = arith.constant 1.000000e+00 : f32
    %399 = vector.broadcast %cst_204 : f32 to vector<8x128xf32>
    %400 = arith.addf %399, %398 : vector<8x128xf32>
    %401 = arith.divf %399, %400 : vector<8x128xf32>
    %402 = math.tanh %396 : vector<8x128xf32>
    %403 = vector.extract_strided_slice %401 {offsets = [0, 0], sizes = [8, 32], strides = [1, 1]} : vector<8x128xf32> to vector<8x32xf32>
    %404 = vector.extract_strided_slice %401 {offsets = [0, 32], sizes = [8, 32], strides = [1, 1]} : vector<8x128xf32> to vector<8x32xf32>
    %405 = vector.extract_strided_slice %401 {offsets = [0, 96], sizes = [8, 32], strides = [1, 1]} : vector<8x128xf32> to vector<8x32xf32>
    %406 = vector.extract_strided_slice %402 {offsets = [0, 64], sizes = [8, 32], strides = [1, 1]} : vector<8x128xf32> to vector<8x32xf32>
    %c0_205 = arith.constant 0 : index
    %c0_206 = arith.constant 0 : index
    %407 = vector.load %arg12[%c0_205, %c0_206] : memref<8x32xf32, #tpu.memory_space<vmem>>, vector<8x32xf32>
    %408 = arith.mulf %404, %407 : vector<8x32xf32>
    %409 = arith.mulf %403, %406 : vector<8x32xf32>
    %410 = arith.addf %408, %409 : vector<8x32xf32>
    %411 = math.tanh %410 : vector<8x32xf32>
    %412 = arith.mulf %405, %411 : vector<8x32xf32>
    %c0_207 = arith.constant 0 : index
    %c0_208 = arith.constant 0 : index
    %413 = vector.load %arg12[%c0_207, %c0_208] : memref<8x32xf32, #tpu.memory_space<vmem>>, vector<8x32xf32>
    tpu.vector_store %arg12[%c0_207, %c0_208], %410 {strides = array<i32>} : memref<8x32xf32, #tpu.memory_space<vmem>>, vector<8x32xf32>,
    %cst_209 = arith.constant dense<0.000000e+00> : vector<8x4xf32>
    %414 = tpu.matmul %412, %1, %cst_209 {dimension_numbers = #tpu.dot_dimension_numbers<[1], [0], [0], [1], [0, 0, 1, 1], [], []>} : vector<8x32xf32>, vector<32x4xf32>, vector<8x4xf32> -> vector<8x4xf32>
    %415 = vector.broadcast %2 : vector<1x4xf32> to vector<8x4xf32>
    %416 = arith.addf %414, %415 : vector<8x4xf32>
    %417 = arith.negf %416 : vector<8x4xf32>
    %418 = math.exp %417 : vector<8x4xf32>
    %cst_210 = arith.constant 1.000000e+00 : f32
    %419 = vector.broadcast %cst_210 : f32 to vector<8x4xf32>
    %420 = arith.addf %419, %418 : vector<8x4xf32>
    %421 = arith.divf %419, %420 : vector<8x4xf32>
    %422 = arith.sitofp %c5_i32 : i32 to f32
    %cst_211 = arith.constant dense<0.000000e+00> : vector<8x4xf32>
    %423 = tpu.matmul %412, %3, %cst_211 {dimension_numbers = #tpu.dot_dimension_numbers<[1], [0], [0], [1], [0, 0, 1, 1], [], []>} : vector<8x32xf32>, vector<32x4xf32>, vector<8x4xf32> -> vector<8x4xf32>
    %cst_212 = arith.constant dense<0.000000e+00> : vector<8x4xf32>
    %424 = tpu.matmul %421, %4, %cst_212 {dimension_numbers = #tpu.dot_dimension_numbers<[1], [0], [0], [1], [0, 0, 1, 1], [], []>} : vector<8x4xf32>, vector<4x4xf32>, vector<8x4xf32> -> vector<8x4xf32>
    %425 = arith.addf %423, %424 : vector<8x4xf32>
    %426 = vector.broadcast %422 : f32 to vector<1x4xf32>
    %427 = arith.mulf %426, %5 : vector<1x4xf32>
    %428 = vector.broadcast %427 : vector<1x4xf32> to vector<8x4xf32>
    %429 = arith.addf %425, %428 : vector<8x4xf32>
    %430 = vector.broadcast %6 : vector<1x4xf32> to vector<8x4xf32>
    %431 = arith.addf %429, %430 : vector<8x4xf32>
    %432 = arith.negf %431 : vector<8x4xf32>
    %433 = math.exp %432 : vector<8x4xf32>
    %cst_213 = arith.constant 1.000000e+00 : f32
    %434 = vector.broadcast %cst_213 : f32 to vector<8x4xf32>
    %435 = arith.addf %434, %433 : vector<8x4xf32>
    %436 = arith.divf %434, %435 : vector<8x4xf32>
    %cst_214 = arith.constant 0.788927912 : f32
    %437 = vector.broadcast %cst_214 : f32 to vector<8x4xf32>
    %438 = arith.mulf %437, %436 : vector<8x4xf32>
    %cst_215 = arith.constant 0.010553604 : f32
    %439 = vector.broadcast %cst_215 : f32 to vector<8x4xf32>
    %440 = arith.addf %438, %439 : vector<8x4xf32>
    %441 = arith.index_cast %c5_i32 : i32 to index
    %c0_216 = arith.constant 0 : index
    %c0_217 = arith.constant 0 : index
    %442 = vector.load %arg1[%441, %c0_216, %c0_217] : memref<8x8x4xf32, #tpu.memory_space<vmem>>, vector<1x8x4xf32>
    %443 = vector.shape_cast %442 : vector<1x8x4xf32> to vector<8x4xf32>
    %444 = arith.cmpf olt, %443, %440 : vector<8x4xf32>
    %445 = vector.extract_strided_slice %391 {offsets = [0, 32], sizes = [8, 4], strides = [1, 1]} : vector<8x36xf32> to vector<8x4xf32>
    %c0_218 = arith.constant 0 : index
    %c0_219 = arith.constant 0 : index
    %446 = vector.load %arg13[%c0_218, %c0_219] : memref<8x4xf32, #tpu.memory_space<vmem>>, vector<8x4xf32>
    %c0_220 = arith.constant 0 : index
    %c0_221 = arith.constant 0 : index
    %447 = vector.load %arg14[%c0_220, %c0_221] : memref<8x4xf32, #tpu.memory_space<vmem>>, vector<8x4xf32>
    %cst_222 = arith.constant 0.000000e+00 : f32
    %448 = vector.broadcast %cst_222 : f32 to vector<8x4xf32>
    %449 = arith.cmpf oeq, %446, %448 : vector<8x4xf32>
    %450 = arith.andi %444, %449 : vector<8x4xi1>
    %451 = arith.select %450, %421, %446 : vector<8x4xi1>, vector<8x4xf32>
    %c0_223 = arith.constant 0 : index
    %c0_224 = arith.constant 0 : index
    %452 = vector.load %arg13[%c0_223, %c0_224] : memref<8x4xf32, #tpu.memory_space<vmem>>, vector<8x4xf32>
    tpu.vector_store %arg13[%c0_223, %c0_224], %451 {strides = array<i32>} : memref<8x4xf32, #tpu.memory_space<vmem>>, vector<8x4xf32>,
    %cst_225 = arith.constant 0.000000e+00 : f32
    %453 = vector.broadcast %cst_225 : f32 to vector<8x4xf32>
    %454 = arith.cmpf oeq, %445, %453 : vector<8x4xf32>
    %455 = arith.andi %444, %454 : vector<8x4xi1>
    %cst_226 = arith.constant 1.000000e+00 : f32
    %456 = vector.broadcast %cst_226 : f32 to vector<8x4xf32>
    %457 = arith.select %455, %456, %445 : vector<8x4xi1>, vector<8x4xf32>
    %cst_227 = arith.constant -1.000000e+00 : f32
    %458 = vector.broadcast %cst_227 : f32 to vector<8x4xf32>
    %459 = arith.cmpf oeq, %447, %458 : vector<8x4xf32>
    %460 = arith.andi %459, %444 : vector<8x4xi1>
    %461 = vector.broadcast %422 : f32 to vector<8x4xf32>
    %462 = arith.select %460, %461, %447 : vector<8x4xi1>, vector<8x4xf32>
    %c0_228 = arith.constant 0 : index
    %c0_229 = arith.constant 0 : index
    %463 = vector.load %arg14[%c0_228, %c0_229] : memref<8x4xf32, #tpu.memory_space<vmem>>, vector<8x4xf32>
    tpu.vector_store %arg14[%c0_228, %c0_229], %462 {strides = array<i32>} : memref<8x4xf32, #tpu.memory_space<vmem>>, vector<8x4xf32>,
    %c0_230 = arith.constant 0 : index
    %c0_231 = arith.constant 0 : index
    %464 = vector.load %arg11[%c0_230, %c0_231] : memref<8x36xf32, #tpu.memory_space<vmem>>, vector<8x32xf32>
    tpu.vector_store %arg11[%c0_230, %c0_231], %412 {strides = array<i32>} : memref<8x36xf32, #tpu.memory_space<vmem>>, vector<8x32xf32>,
    %c0_232 = arith.constant 0 : index
    %c32_233 = arith.constant 32 : index
    %465 = vector.load %arg11[%c0_232, %c32_233] : memref<8x36xf32, #tpu.memory_space<vmem>>, vector<8x4xf32>
    tpu.vector_store %arg11[%c0_232, %c32_233], %457 {strides = array<i32>} : memref<8x36xf32, #tpu.memory_space<vmem>>, vector<8x4xf32>,
    %c6_i32 = arith.constant 6 : i32
    %c0_234 = arith.constant 0 : index
    %c0_235 = arith.constant 0 : index
    %466 = vector.load %arg11[%c0_234, %c0_235] : memref<8x36xf32, #tpu.memory_space<vmem>>, vector<8x36xf32>
    %467 = arith.index_cast %c6_i32 : i32 to index
    %c0_236 = arith.constant 0 : index
    %c0_237 = arith.constant 0 : index
    %468 = vector.load %arg0[%467, %c0_236, %c0_237] : memref<8x8x128xf32, #tpu.memory_space<vmem>>, vector<1x8x128xf32>
    %469 = vector.shape_cast %468 : vector<1x8x128xf32> to vector<8x128xf32>
    %cst_238 = arith.constant dense<0.000000e+00> : vector<8x128xf32>
    %470 = tpu.matmul %466, %0, %cst_238 {dimension_numbers = #tpu.dot_dimension_numbers<[1], [0], [0], [1], [0, 0, 1, 1], [], []>} : vector<8x36xf32>, vector<36x128xf32>, vector<8x128xf32> -> vector<8x128xf32>
    %471 = arith.addf %469, %470 : vector<8x128xf32>
    %472 = arith.negf %471 : vector<8x128xf32>
    %473 = math.exp %472 : vector<8x128xf32>
    %cst_239 = arith.constant 1.000000e+00 : f32
    %474 = vector.broadcast %cst_239 : f32 to vector<8x128xf32>
    %475 = arith.addf %474, %473 : vector<8x128xf32>
    %476 = arith.divf %474, %475 : vector<8x128xf32>
    %477 = math.tanh %471 : vector<8x128xf32>
    %478 = vector.extract_strided_slice %476 {offsets = [0, 0], sizes = [8, 32], strides = [1, 1]} : vector<8x128xf32> to vector<8x32xf32>
    %479 = vector.extract_strided_slice %476 {offsets = [0, 32], sizes = [8, 32], strides = [1, 1]} : vector<8x128xf32> to vector<8x32xf32>
    %480 = vector.extract_strided_slice %476 {offsets = [0, 96], sizes = [8, 32], strides = [1, 1]} : vector<8x128xf32> to vector<8x32xf32>
    %481 = vector.extract_strided_slice %477 {offsets = [0, 64], sizes = [8, 32], strides = [1, 1]} : vector<8x128xf32> to vector<8x32xf32>
    %c0_240 = arith.constant 0 : index
    %c0_241 = arith.constant 0 : index
    %482 = vector.load %arg12[%c0_240, %c0_241] : memref<8x32xf32, #tpu.memory_space<vmem>>, vector<8x32xf32>
    %483 = arith.mulf %479, %482 : vector<8x32xf32>
    %484 = arith.mulf %478, %481 : vector<8x32xf32>
    %485 = arith.addf %483, %484 : vector<8x32xf32>
    %486 = math.tanh %485 : vector<8x32xf32>
    %487 = arith.mulf %480, %486 : vector<8x32xf32>
    %c0_242 = arith.constant 0 : index
    %c0_243 = arith.constant 0 : index
    %488 = vector.load %arg12[%c0_242, %c0_243] : memref<8x32xf32, #tpu.memory_space<vmem>>, vector<8x32xf32>
    tpu.vector_store %arg12[%c0_242, %c0_243], %485 {strides = array<i32>} : memref<8x32xf32, #tpu.memory_space<vmem>>, vector<8x32xf32>,
    %cst_244 = arith.constant dense<0.000000e+00> : vector<8x4xf32>
    %489 = tpu.matmul %487, %1, %cst_244 {dimension_numbers = #tpu.dot_dimension_numbers<[1], [0], [0], [1], [0, 0, 1, 1], [], []>} : vector<8x32xf32>, vector<32x4xf32>, vector<8x4xf32> -> vector<8x4xf32>
    %490 = vector.broadcast %2 : vector<1x4xf32> to vector<8x4xf32>
    %491 = arith.addf %489, %490 : vector<8x4xf32>
    %492 = arith.negf %491 : vector<8x4xf32>
    %493 = math.exp %492 : vector<8x4xf32>
    %cst_245 = arith.constant 1.000000e+00 : f32
    %494 = vector.broadcast %cst_245 : f32 to vector<8x4xf32>
    %495 = arith.addf %494, %493 : vector<8x4xf32>
    %496 = arith.divf %494, %495 : vector<8x4xf32>
    %497 = arith.sitofp %c6_i32 : i32 to f32
    %cst_246 = arith.constant dense<0.000000e+00> : vector<8x4xf32>
    %498 = tpu.matmul %487, %3, %cst_246 {dimension_numbers = #tpu.dot_dimension_numbers<[1], [0], [0], [1], [0, 0, 1, 1], [], []>} : vector<8x32xf32>, vector<32x4xf32>, vector<8x4xf32> -> vector<8x4xf32>
    %cst_247 = arith.constant dense<0.000000e+00> : vector<8x4xf32>
    %499 = tpu.matmul %496, %4, %cst_247 {dimension_numbers = #tpu.dot_dimension_numbers<[1], [0], [0], [1], [0, 0, 1, 1], [], []>} : vector<8x4xf32>, vector<4x4xf32>, vector<8x4xf32> -> vector<8x4xf32>
    %500 = arith.addf %498, %499 : vector<8x4xf32>
    %501 = vector.broadcast %497 : f32 to vector<1x4xf32>
    %502 = arith.mulf %501, %5 : vector<1x4xf32>
    %503 = vector.broadcast %502 : vector<1x4xf32> to vector<8x4xf32>
    %504 = arith.addf %500, %503 : vector<8x4xf32>
    %505 = vector.broadcast %6 : vector<1x4xf32> to vector<8x4xf32>
    %506 = arith.addf %504, %505 : vector<8x4xf32>
    %507 = arith.negf %506 : vector<8x4xf32>
    %508 = math.exp %507 : vector<8x4xf32>
    %cst_248 = arith.constant 1.000000e+00 : f32
    %509 = vector.broadcast %cst_248 : f32 to vector<8x4xf32>
    %510 = arith.addf %509, %508 : vector<8x4xf32>
    %511 = arith.divf %509, %510 : vector<8x4xf32>
    %cst_249 = arith.constant 0.788927912 : f32
    %512 = vector.broadcast %cst_249 : f32 to vector<8x4xf32>
    %513 = arith.mulf %512, %511 : vector<8x4xf32>
    %cst_250 = arith.constant 0.010553604 : f32
    %514 = vector.broadcast %cst_250 : f32 to vector<8x4xf32>
    %515 = arith.addf %513, %514 : vector<8x4xf32>
    %516 = arith.index_cast %c6_i32 : i32 to index
    %c0_251 = arith.constant 0 : index
    %c0_252 = arith.constant 0 : index
    %517 = vector.load %arg1[%516, %c0_251, %c0_252] : memref<8x8x4xf32, #tpu.memory_space<vmem>>, vector<1x8x4xf32>
    %518 = vector.shape_cast %517 : vector<1x8x4xf32> to vector<8x4xf32>
    %519 = arith.cmpf olt, %518, %515 : vector<8x4xf32>
    %520 = vector.extract_strided_slice %466 {offsets = [0, 32], sizes = [8, 4], strides = [1, 1]} : vector<8x36xf32> to vector<8x4xf32>
    %c0_253 = arith.constant 0 : index
    %c0_254 = arith.constant 0 : index
    %521 = vector.load %arg13[%c0_253, %c0_254] : memref<8x4xf32, #tpu.memory_space<vmem>>, vector<8x4xf32>
    %c0_255 = arith.constant 0 : index
    %c0_256 = arith.constant 0 : index
    %522 = vector.load %arg14[%c0_255, %c0_256] : memref<8x4xf32, #tpu.memory_space<vmem>>, vector<8x4xf32>
    %cst_257 = arith.constant 0.000000e+00 : f32
    %523 = vector.broadcast %cst_257 : f32 to vector<8x4xf32>
    %524 = arith.cmpf oeq, %521, %523 : vector<8x4xf32>
    %525 = arith.andi %519, %524 : vector<8x4xi1>
    %526 = arith.select %525, %496, %521 : vector<8x4xi1>, vector<8x4xf32>
    %c0_258 = arith.constant 0 : index
    %c0_259 = arith.constant 0 : index
    %527 = vector.load %arg13[%c0_258, %c0_259] : memref<8x4xf32, #tpu.memory_space<vmem>>, vector<8x4xf32>
    tpu.vector_store %arg13[%c0_258, %c0_259], %526 {strides = array<i32>} : memref<8x4xf32, #tpu.memory_space<vmem>>, vector<8x4xf32>,
    %cst_260 = arith.constant 0.000000e+00 : f32
    %528 = vector.broadcast %cst_260 : f32 to vector<8x4xf32>
    %529 = arith.cmpf oeq, %520, %528 : vector<8x4xf32>
    %530 = arith.andi %519, %529 : vector<8x4xi1>
    %cst_261 = arith.constant 1.000000e+00 : f32
    %531 = vector.broadcast %cst_261 : f32 to vector<8x4xf32>
    %532 = arith.select %530, %531, %520 : vector<8x4xi1>, vector<8x4xf32>
    %cst_262 = arith.constant -1.000000e+00 : f32
    %533 = vector.broadcast %cst_262 : f32 to vector<8x4xf32>
    %534 = arith.cmpf oeq, %522, %533 : vector<8x4xf32>
    %535 = arith.andi %534, %519 : vector<8x4xi1>
    %536 = vector.broadcast %497 : f32 to vector<8x4xf32>
    %537 = arith.select %535, %536, %522 : vector<8x4xi1>, vector<8x4xf32>
    %c0_263 = arith.constant 0 : index
    %c0_264 = arith.constant 0 : index
    %538 = vector.load %arg14[%c0_263, %c0_264] : memref<8x4xf32, #tpu.memory_space<vmem>>, vector<8x4xf32>
    tpu.vector_store %arg14[%c0_263, %c0_264], %537 {strides = array<i32>} : memref<8x4xf32, #tpu.memory_space<vmem>>, vector<8x4xf32>,
    %c0_265 = arith.constant 0 : index
    %c0_266 = arith.constant 0 : index
    %539 = vector.load %arg11[%c0_265, %c0_266] : memref<8x36xf32, #tpu.memory_space<vmem>>, vector<8x32xf32>
    tpu.vector_store %arg11[%c0_265, %c0_266], %487 {strides = array<i32>} : memref<8x36xf32, #tpu.memory_space<vmem>>, vector<8x32xf32>,
    %c0_267 = arith.constant 0 : index
    %c32_268 = arith.constant 32 : index
    %540 = vector.load %arg11[%c0_267, %c32_268] : memref<8x36xf32, #tpu.memory_space<vmem>>, vector<8x4xf32>
    tpu.vector_store %arg11[%c0_267, %c32_268], %532 {strides = array<i32>} : memref<8x36xf32, #tpu.memory_space<vmem>>, vector<8x4xf32>,
    %c7_i32 = arith.constant 7 : i32
    %c0_269 = arith.constant 0 : index
    %c0_270 = arith.constant 0 : index
    %541 = vector.load %arg11[%c0_269, %c0_270] : memref<8x36xf32, #tpu.memory_space<vmem>>, vector<8x36xf32>
    %542 = arith.index_cast %c7_i32 : i32 to index
    %c0_271 = arith.constant 0 : index
    %c0_272 = arith.constant 0 : index
    %543 = vector.load %arg0[%542, %c0_271, %c0_272] : memref<8x8x128xf32, #tpu.memory_space<vmem>>, vector<1x8x128xf32>
    %544 = vector.shape_cast %543 : vector<1x8x128xf32> to vector<8x128xf32>
    %cst_273 = arith.constant dense<0.000000e+00> : vector<8x128xf32>
    %545 = tpu.matmul %541, %0, %cst_273 {dimension_numbers = #tpu.dot_dimension_numbers<[1], [0], [0], [1], [0, 0, 1, 1], [], []>} : vector<8x36xf32>, vector<36x128xf32>, vector<8x128xf32> -> vector<8x128xf32>
    %546 = arith.addf %544, %545 : vector<8x128xf32>
    %547 = arith.negf %546 : vector<8x128xf32>
    %548 = math.exp %547 : vector<8x128xf32>
    %cst_274 = arith.constant 1.000000e+00 : f32
    %549 = vector.broadcast %cst_274 : f32 to vector<8x128xf32>
    %550 = arith.addf %549, %548 : vector<8x128xf32>
    %551 = arith.divf %549, %550 : vector<8x128xf32>
    %552 = math.tanh %546 : vector<8x128xf32>
    %553 = vector.extract_strided_slice %551 {offsets = [0, 0], sizes = [8, 32], strides = [1, 1]} : vector<8x128xf32> to vector<8x32xf32>
    %554 = vector.extract_strided_slice %551 {offsets = [0, 32], sizes = [8, 32], strides = [1, 1]} : vector<8x128xf32> to vector<8x32xf32>
    %555 = vector.extract_strided_slice %551 {offsets = [0, 96], sizes = [8, 32], strides = [1, 1]} : vector<8x128xf32> to vector<8x32xf32>
    %556 = vector.extract_strided_slice %552 {offsets = [0, 64], sizes = [8, 32], strides = [1, 1]} : vector<8x128xf32> to vector<8x32xf32>
    %c0_275 = arith.constant 0 : index
    %c0_276 = arith.constant 0 : index
    %557 = vector.load %arg12[%c0_275, %c0_276] : memref<8x32xf32, #tpu.memory_space<vmem>>, vector<8x32xf32>
    %558 = arith.mulf %554, %557 : vector<8x32xf32>
    %559 = arith.mulf %553, %556 : vector<8x32xf32>
    %560 = arith.addf %558, %559 : vector<8x32xf32>
    %561 = math.tanh %560 : vector<8x32xf32>
    %562 = arith.mulf %555, %561 : vector<8x32xf32>
    %c0_277 = arith.constant 0 : index
    %c0_278 = arith.constant 0 : index
    %563 = vector.load %arg12[%c0_277, %c0_278] : memref<8x32xf32, #tpu.memory_space<vmem>>, vector<8x32xf32>
    tpu.vector_store %arg12[%c0_277, %c0_278], %560 {strides = array<i32>} : memref<8x32xf32, #tpu.memory_space<vmem>>, vector<8x32xf32>,
    %cst_279 = arith.constant dense<0.000000e+00> : vector<8x4xf32>
    %564 = tpu.matmul %562, %1, %cst_279 {dimension_numbers = #tpu.dot_dimension_numbers<[1], [0], [0], [1], [0, 0, 1, 1], [], []>} : vector<8x32xf32>, vector<32x4xf32>, vector<8x4xf32> -> vector<8x4xf32>
    %565 = vector.broadcast %2 : vector<1x4xf32> to vector<8x4xf32>
    %566 = arith.addf %564, %565 : vector<8x4xf32>
    %567 = arith.negf %566 : vector<8x4xf32>
    %568 = math.exp %567 : vector<8x4xf32>
    %cst_280 = arith.constant 1.000000e+00 : f32
    %569 = vector.broadcast %cst_280 : f32 to vector<8x4xf32>
    %570 = arith.addf %569, %568 : vector<8x4xf32>
    %571 = arith.divf %569, %570 : vector<8x4xf32>
    %572 = arith.sitofp %c7_i32 : i32 to f32
    %cst_281 = arith.constant dense<0.000000e+00> : vector<8x4xf32>
    %573 = tpu.matmul %562, %3, %cst_281 {dimension_numbers = #tpu.dot_dimension_numbers<[1], [0], [0], [1], [0, 0, 1, 1], [], []>} : vector<8x32xf32>, vector<32x4xf32>, vector<8x4xf32> -> vector<8x4xf32>
    %cst_282 = arith.constant dense<0.000000e+00> : vector<8x4xf32>
    %574 = tpu.matmul %571, %4, %cst_282 {dimension_numbers = #tpu.dot_dimension_numbers<[1], [0], [0], [1], [0, 0, 1, 1], [], []>} : vector<8x4xf32>, vector<4x4xf32>, vector<8x4xf32> -> vector<8x4xf32>
    %575 = arith.addf %573, %574 : vector<8x4xf32>
    %576 = vector.broadcast %572 : f32 to vector<1x4xf32>
    %577 = arith.mulf %576, %5 : vector<1x4xf32>
    %578 = vector.broadcast %577 : vector<1x4xf32> to vector<8x4xf32>
    %579 = arith.addf %575, %578 : vector<8x4xf32>
    %580 = vector.broadcast %6 : vector<1x4xf32> to vector<8x4xf32>
    %581 = arith.addf %579, %580 : vector<8x4xf32>
    %582 = arith.negf %581 : vector<8x4xf32>
    %583 = math.exp %582 : vector<8x4xf32>
    %cst_283 = arith.constant 1.000000e+00 : f32
    %584 = vector.broadcast %cst_283 : f32 to vector<8x4xf32>
    %585 = arith.addf %584, %583 : vector<8x4xf32>
    %586 = arith.divf %584, %585 : vector<8x4xf32>
    %cst_284 = arith.constant 0.788927912 : f32
    %587 = vector.broadcast %cst_284 : f32 to vector<8x4xf32>
    %588 = arith.mulf %587, %586 : vector<8x4xf32>
    %cst_285 = arith.constant 0.010553604 : f32
    %589 = vector.broadcast %cst_285 : f32 to vector<8x4xf32>
    %590 = arith.addf %588, %589 : vector<8x4xf32>
    %591 = arith.index_cast %c7_i32 : i32 to index
    %c0_286 = arith.constant 0 : index
    %c0_287 = arith.constant 0 : index
    %592 = vector.load %arg1[%591, %c0_286, %c0_287] : memref<8x8x4xf32, #tpu.memory_space<vmem>>, vector<1x8x4xf32>
    %593 = vector.shape_cast %592 : vector<1x8x4xf32> to vector<8x4xf32>
    %594 = arith.cmpf olt, %593, %590 : vector<8x4xf32>
    %595 = vector.extract_strided_slice %541 {offsets = [0, 32], sizes = [8, 4], strides = [1, 1]} : vector<8x36xf32> to vector<8x4xf32>
    %c0_288 = arith.constant 0 : index
    %c0_289 = arith.constant 0 : index
    %596 = vector.load %arg13[%c0_288, %c0_289] : memref<8x4xf32, #tpu.memory_space<vmem>>, vector<8x4xf32>
    %c0_290 = arith.constant 0 : index
    %c0_291 = arith.constant 0 : index
    %597 = vector.load %arg14[%c0_290, %c0_291] : memref<8x4xf32, #tpu.memory_space<vmem>>, vector<8x4xf32>
    %cst_292 = arith.constant 0.000000e+00 : f32
    %598 = vector.broadcast %cst_292 : f32 to vector<8x4xf32>
    %599 = arith.cmpf oeq, %596, %598 : vector<8x4xf32>
    %600 = arith.andi %594, %599 : vector<8x4xi1>
    %601 = arith.select %600, %571, %596 : vector<8x4xi1>, vector<8x4xf32>
    %c0_293 = arith.constant 0 : index
    %c0_294 = arith.constant 0 : index
    %602 = vector.load %arg13[%c0_293, %c0_294] : memref<8x4xf32, #tpu.memory_space<vmem>>, vector<8x4xf32>
    tpu.vector_store %arg13[%c0_293, %c0_294], %601 {strides = array<i32>} : memref<8x4xf32, #tpu.memory_space<vmem>>, vector<8x4xf32>,
    %cst_295 = arith.constant 0.000000e+00 : f32
    %603 = vector.broadcast %cst_295 : f32 to vector<8x4xf32>
    %604 = arith.cmpf oeq, %595, %603 : vector<8x4xf32>
    %605 = arith.andi %594, %604 : vector<8x4xi1>
    %cst_296 = arith.constant 1.000000e+00 : f32
    %606 = vector.broadcast %cst_296 : f32 to vector<8x4xf32>
    %607 = arith.select %605, %606, %595 : vector<8x4xi1>, vector<8x4xf32>
    %cst_297 = arith.constant -1.000000e+00 : f32
    %608 = vector.broadcast %cst_297 : f32 to vector<8x4xf32>
    %609 = arith.cmpf oeq, %597, %608 : vector<8x4xf32>
    %610 = arith.andi %609, %594 : vector<8x4xi1>
    %611 = vector.broadcast %572 : f32 to vector<8x4xf32>
    %612 = arith.select %610, %611, %597 : vector<8x4xi1>, vector<8x4xf32>
    %c0_298 = arith.constant 0 : index
    %c0_299 = arith.constant 0 : index
    %613 = vector.load %arg14[%c0_298, %c0_299] : memref<8x4xf32, #tpu.memory_space<vmem>>, vector<8x4xf32>
    tpu.vector_store %arg14[%c0_298, %c0_299], %612 {strides = array<i32>} : memref<8x4xf32, #tpu.memory_space<vmem>>, vector<8x4xf32>,
    %c0_300 = arith.constant 0 : index
    %c0_301 = arith.constant 0 : index
    %614 = vector.load %arg11[%c0_300, %c0_301] : memref<8x36xf32, #tpu.memory_space<vmem>>, vector<8x32xf32>
    tpu.vector_store %arg11[%c0_300, %c0_301], %562 {strides = array<i32>} : memref<8x36xf32, #tpu.memory_space<vmem>>, vector<8x32xf32>,
    %c0_302 = arith.constant 0 : index
    %c32_303 = arith.constant 32 : index
    %615 = vector.load %arg11[%c0_302, %c32_303] : memref<8x36xf32, #tpu.memory_space<vmem>>, vector<8x4xf32>
    tpu.vector_store %arg11[%c0_302, %c32_303], %607 {strides = array<i32>} : memref<8x36xf32, #tpu.memory_space<vmem>>, vector<8x4xf32>,
    %c8_i32 = arith.constant 8 : i32
    %c0_304 = arith.constant 0 : index
    %c0_305 = arith.constant 0 : index
    %616 = vector.load %arg13[%c0_304, %c0_305] : memref<8x4xf32, #tpu.memory_space<vmem>>, vector<8x4xf32>
    %c0_306 = arith.constant 0 : index
    %c0_307 = arith.constant 0 : index
    %617 = vector.load %arg14[%c0_306, %c0_307] : memref<8x4xf32, #tpu.memory_space<vmem>>, vector<8x4xf32>
    %cst_308 = arith.constant 0.000000e+00 : f32
    %618 = vector.broadcast %cst_308 : f32 to vector<8x4xf32>
    %619 = arith.cmpf oeq, %616, %618 : vector<8x4xf32>
    %620 = arith.select %619, %571, %616 : vector<8x4xi1>, vector<8x4xf32>
    %c0_309 = arith.constant 0 : index
    %c0_310 = arith.constant 0 : index
    %621 = vector.load %arg9[%c0_309, %c0_310] : memref<8x4xf32, #tpu.memory_space<vmem>>, vector<8x4xf32>
    tpu.vector_store %arg9[%c0_309, %c0_310], %620 {strides = array<i32>} : memref<8x4xf32, #tpu.memory_space<vmem>>, vector<8x4xf32>,
    %cst_311 = arith.constant -1.000000e+00 : f32
    %622 = vector.broadcast %cst_311 : f32 to vector<8x4xf32>
    %623 = arith.cmpf oeq, %617, %622 : vector<8x4xf32>
    %cst_312 = arith.constant 7.000000e+00 : f32
    %624 = vector.broadcast %cst_312 : f32 to vector<8x4xf32>
    %625 = arith.select %623, %624, %617 : vector<8x4xi1>, vector<8x4xf32>
    %c0_313 = arith.constant 0 : index
    %c0_314 = arith.constant 0 : index
    %626 = vector.load %arg10[%c0_313, %c0_314] : memref<8x4xf32, #tpu.memory_space<vmem>>, vector<8x4xf32>
    tpu.vector_store %arg10[%c0_313, %c0_314], %625 {strides = array<i32>} : memref<8x4xf32, #tpu.memory_space<vmem>>, vector<8x4xf32>,
    return
  }
}

</mosaic_0001>

<bundles_post_ra>
// kernel: tpu_custom_call.1
= control target key start
LH: loop header
LB: loop body
LE: loop exit
PB: predicated region body
PF: predicated region fallthrough
CT: control target
= control target key end

     0   :  { %v3984_v0 = vmov 0.0|0.0   ;;  %vm3985_vm0 = vmmov 0   ;;  %v3986_v4 = vmov 0.0   ;;  %vm51_vm1 = vcmask 293888   ;;  %s3987_s25 = smov 64   ;;  %s3988_s26 = smov 32   ;;  %s4610_s2 = inlined_call_operand.vmem [shape: f32[36,128], index: 2, kind: input, shape index: {}]   ;;  %s4611_s0 = inlined_call_operand.vmem [shape: f32[8,8,128], index: 0, kind: input, shape index: {}]   ;;  %s4612_s3 = inlined_call_operand.vmem [shape: f32[32,4], index: 3, kind: input, shape index: {}]   ;;  %s4613_s5 = inlined_call_operand.vmem [shape: f32[32,4], index: 5, kind: input, shape index: {}]   ;;  %s4614_s6 = inlined_call_operand.vmem [shape: f32[4,4], index: 6, kind: input, shape index: {}]   ;;  %s4615_s4 = inlined_call_operand.vmem [shape: f32[1,4], index: 4, kind: input, shape index: {}]   ;;  %s4616_s7 = inlined_call_operand.vmem [shape: f32[1,4], index: 7, kind: input, shape index: {}]   ;;  %s4617_s8 = inlined_call_operand.vmem [shape: f32[1,4], index: 8, kind: input, shape index: {}]   ;;  %s4618_s1 = inlined_call_operand.vmem [shape: f32[8,8,4], index: 1, kind: input, shape index: {}]   ;;  %s4619_s10 = inlined_call_operand.vmem [shape: f32[8,4], index: 10, kind: output, shape index: {1}]   ;;  %s4620_s9 = inlined_call_operand.vmem [shape: f32[8,4], index: 9, kind: output, shape index: {0}]  }
   0x1   :  { %3699 = vmatprep.subr.bf16.mxu0 %v3984_v0  ;;  %v34_v1 = vld [vmem:[%s4610_s2] sm:$0xff]  ;;  %v35_v2 = vld [vmem:[%s4610_s2 + $0x8] sm:$0xff]  ;;  %v36_v3 = vld [vmem:[%s4610_s2 + $0x10] sm:$0xff]  ;;  %3389 = vmatprep.mubr.msk.f32.mxu0 %vm3985_vm0, %v3986_v4  ;;  %52 = vst.msk [vmem:[#allocation2] sm:$0xff] %vm51_vm1, %v3986_v4  ;;  %vm63_vm2 = vcmask 1043456   ;;  %vm53_vm3 = vcmask 261120   ;;  %v407_v59 = vlaneseq }
   0x2   :  { %v4059_v5 = vpack.c.bf16 %v35_v2, %v34_v1  ;;  %v37_v6 = vld [vmem:[%s4610_s2 + $0x18] sm:$0xff]  ;;  %3705 = vmatprep.subr.bf16.mxu1 %v3984_v0  ;;  %3400 = vmatprep.mubr.msk.f32.mxu1 %vm3985_vm0, %v3986_v4  ;;  %v4078_v8 = vld [vmem:[%s4610_s2 + $0x20] sm:$0xf]  ;;  %54 = vst.msk [vmem:[#allocation3] sm:$0xff] %vm53_vm3, %v3986_v4  ;;  %v40_v27 = vld [vmem:[%s4612_s3 + $0x8] sm:$0xff]  ;;  %vm55_vm4 = vcmask 31744  }
   0x3   :  { %v4070_v7 = vpack.c.bf16 %v37_v6, %v36_v3  ;;  %v59_v10 = vld [vmem:[%s4611_s0] sm:$0xff]  ;;  %v45_v31 = vld [vmem:[%s4613_s5 + $0x8] sm:$0xff]  ;;  %v41_v32 = vld [vmem:[%s4612_s3 + $0x10] sm:$0xff]  ;;  %56 = vst.msk [vmem:[#allocation4] sm:$0xff] %vm55_vm4, %v3986_v4  ;;  %v3990_v46 = vmov 0   ;;  %v3991_v58 = vmov -1.0  }
   0x4   :  { %3701 = vmatpush3.bf16.msra.mxu0 %v4059_v5  ;;  %v39_v26 = vld [vmem:[%s4612_s3] sm:$0xff]  ;;  %v42_v33 = vld [vmem:[%s4612_s3 + $0x18] sm:$0xff]  ;;  %v46_v35 = vld [vmem:[%s4613_s5 + $0x10] sm:$0xff]  ;;  %s3989_s3 = smov 96   ;;  %57 = vst.msk [vmem:[#allocation5] sm:$0xff] %vm55_vm4, %v3991_v58  ;;  %v408_v60 = vshrl.u32 %v407_v59, 7 }
   0x5   :  { %3702 = vmatprep.subr.bf16.mxu0 %v3984_v0  ;;  %v44_v28 = vld [vmem:[%s4613_s5] sm:$0xff]  ;;  %v4106_v30 = vpack.c.bf16 %v40_v27, %v39_v26  ;;  %v47_v36 = vld [vmem:[%s4613_s5 + $0x18] sm:$0xff]  ;;  %v4127_v37 = vpack.c.bf16 %v42_v33, %v41_v32  ;;  %vm456_vm13 = vcmask 294144   ;;  %v3158_v27 = vld [vmem:[%s4611_s0 + $0x8] sm:$0xff] }
   0x6   :  { %v4118_v34 = vpack.c.bf16 %v45_v31, %v44_v28  ;;  %v4131_v38 = vpack.c.bf16 %v47_v36, %v46_v35  ;;  %v4160_v45 = vld [vmem:[%s4614_s6] sm:$0xf]  ;;  %v4193_v63 = vsub.s32 0, %v408_v60 }
   0x7   :  { %3707 = vmatpush3.bf16.msra.mxu1 %v4106_v30  ;;  %v4173_v48 = vld [vmem:[%s4615_s4] ss:$0 sm:$0xff] }
   0x8   :  { %3704 = vmatpush3.bf16.msra.mxu0 %v4070_v7  ;;  %v4080_v9 = vld [vmem:[#allocation2] sm:$0xff]  ;;  %3708 = vmatprep.subr.bf16.mxu1 %v3984_v0 }
   0x9   :  { %3387 = vmatprep.subr.mxu0 %v3986_v4  ;;  %v145_v15 = vld [vmem:[#allocation3] sm:$0xff]  ;;  %vm436_vm5 = vcmp.eq.f32.partialorder %v4080_v9, 0.0  ;;  %v4190_v61 = vld [vmem:[%s4616_s7] sm:$0x1] }
   0xa   :  { %v437_v47 = vsel %vm436_vm5, 1, %v3990_v46  ;;  %v405_v62 = vmul.f32 0.0, %v4190_v61 }
   0xb   :  { %3710 = vmatpush3.bf16.msra.mxu1 %v4127_v37 }
   0xc   :  { %3388 = vmatpush3.msk.msra.mxu0 %vm63_vm2, %v4078_v8  ;;  %3403 = vmatprep.subr.mxu1 %v3986_v4  ;;  %v410_v1 = vrot.slane %v405_v62, %v4193_v63 }
   0xd   :  { %3390 = vmatmul.mubr.msk.f32.vlgmr.msra.gmra.mrb[0].mxu0 %vm51_vm1, %v4080_v9  ;;  %3711 = vmatprep.subr.bf16.mxu0 %v3984_v0 }
   0xe   :  { %3416 = vmatprep.mubr.msk.f32.mxu0 %vm3985_vm0, %v3986_v4  ;;  %3713 = vmatpush3.bf16.msra.mxu0 %v4118_v34 }
   0xf   :  { %3714 = vmatprep.subr.bf16.mxu0 %v3984_v0 }
  0x12   :  { %3716 = vmatpush3.bf16.msra.mxu0 %v4131_v38 }
  0x13   :  { %3723 = vmatprep.subr.bf16.mxu0 %v3984_v0 }
  0xe0   :  { %v133_v11 = vpop.f32.mrb[0].mxu0 }
  0xe1   :  { %v137_v12 = vadd.f32 %v133_v11, %v59_v10  ;;  %v3391_v13 = vpop.f32.mrb[1].mxu0 }
  0xe3   :  { %3851 = vtanh.f32 %v137_v12  ;;  %v3149_v16 = vmul.f32 -1.442695, %v137_v12 }
  0xe5   :  { %3853 = vpow2.f32 %v3149_v16  ;;  %v430_v16 = vld [vmem:[#allocation4] sm:$0xff] }
  0xe6   :  { %vm432_vm6 = vcmp.eq.f32.partialorder %v430_v16, 0.0 }
  0xed   :  { %v3852_v14 = vpop.eup %3851 }
  0xee   :  { %152 = vrot.lane.b32.xlu0 %v3852_v14, %s3987_s25 }
  0xef   :  { %v3854_v17 = vpop.eup %3853 }
  0xf0   :  { %v141_v18 = vadd.f32 1.0, %v3854_v17 }
  0xf2   :  { %147 = vrot.lane.b32.xlu0 %v145_v15, %s3988_s26  ;;  %3855 = vrcp.f32 %v141_v18  ;;  %v431_v18 = vld [vmem:[#allocation5] sm:$0xff] }
  0xf3   :  { %vm446_vm7 = vcmp.eq.f32.partialorder %v431_v18, -1.0 }
  0xfc   :  { %v3856_v19 = vpop.eup %3855 }
 0x160   :  { %v153_v20 = vpop.permute.xlu0 %152 }
 0x161   :  { %v155_v21 = vmul.f32 %v3856_v19, %v153_v20 }
 0x163   :  { %157 = vrot.lane.b32.xlu1 %v155_v21, %s3988_s26 }
 0x164   :  { %v148_v22 = vpop.permute.xlu0 %147 }
 0x165   :  { %v150_v23 = vmul.f32 %v3856_v19, %v148_v22 }
 0x1d5   :  { %v158_v24 = vpop.permute.xlu1 %157 }
 0x1d6   :  { %v160_v25 = vadd.f32 %v158_v24, %v150_v23 }
 0x1d8   :  { %3857 = vtanh.f32 %v160_v25 }
 0x1e2   :  { %v3858_v29 = vpop.eup %3857 }
 0x1e3   :  { %163 = vrot.lane.b32.xlu1 %v3858_v29, %s3987_s25 }
 0x1e7   :  { %438 = vrot.lane.b32.xlu1 %v437_v47, %s3989_s3 }
 0x255   :  { %v164_v39 = vpop.permute.xlu1 %163 }
 0x256   :  { %v166_v40 = vmul.f32 %v3856_v19, %v164_v39  ;;  %v428_v19 = vld [vmem:[%s4618_s1] sm:$0xff] }
 0x258   :  { %179 = vrot.lane.b32.xlu0 %v166_v40, %s3988_s26 }
 0x259   :  { %v439_v20 = vpop.permute.xlu1 %438 }
 0x25a   :  { %vm440_vm9 = vcmp.ne.s32.totalorder %v439_v20, 0 }
 0x25c   :  { %442 = vrot.lane.b32.xlu0 %v4080_v9, %s3989_s3  ;;  %v4199_v9 = vld [vmem:[%s4617_s8] ss:$0 sm:$0xff] }
 0x260   :  { %168 = vrot.lane.b32.xlu0 %v160_v25, %s3989_s3 }
 0x2ca   :  { %v180_v41 = vpop.permute.xlu0 %179 }
 0x2cb   :  { %451 = vst.msk [vmem:[#allocation2] sm:$0xff] %vm53_vm3, %v180_v41  ;;  %3401 = vmatmul.mubr.msk.f32.vlgmr.msra.gmra.mrb[0].mxu1 %vm53_vm3, %v180_v41  ;;  %3417 = vmatmul.mubr.msk.f32.vlgmr.msra.gmra.mrb[2].mxu0 %vm53_vm3, %v180_v41 }
 0x2cc   :  { %3405 = vmatprep.mubr.msk.f32.mxu1 %vm3985_vm0, %v3986_v4  ;;  %3725 = vmatpush3.bf16.msra.mxu0 %v4106_v30 }
 0x2cd   :  { %3726 = vmatprep.subr.bf16.mxu0 %v3984_v0  ;;  %3440 = vmatprep.mubr.msk.f32.mxu0 %vm3985_vm0, %v3986_v4 }
 0x2ce   :  { %v4151_v42 = vpop.permute.xlu0 %442  ;;  %3404 = vmatpush3.msk.msra.mxu1 %vm63_vm2, %v4160_v45 }
 0x2cf   :  { %3717 = vmatprep.subr.bf16.mxu1 %v3984_v0 }
 0x2d0   :  { %3728 = vmatpush3.bf16.msra.mxu0 %v4127_v37 }
 0x2d1   :  { %3729 = vmatprep.subr.bf16.mxu0 %v3984_v0 }
 0x2d2   :  { %v169_v43 = vpop.permute.xlu0 %168 }
 0x2d3   :  { %171 = vst.msk [vmem:[#allocation3] sm:$0xff] %vm53_vm3, %v169_v43 }
 0x2da   :  { %v542_v44 = vld [vmem:[#allocation3] sm:$0xff] }
 0x2db   :  { %544 = vrot.lane.b32.xlu0 %v542_v44, %s3988_s26 }
 0x39e   :  { %v249_v49 = vpop.f32.mrb[0].mxu1  ;;  %v401_v50 = vpop.f32.mrb[2].mxu0 }
 0x39f   :  { %v250_v51 = vadd.f32 %v4173_v48, %v249_v49  ;;  %v3402_v52 = vpop.f32.mrb[1].mxu1  ;;  %v3418_v53 = vpop.f32.mrb[3].mxu0 }
 0x3a1   :  { %v3152_v54 = vmul.f32 -1.442695, %v250_v51 }
 0x3a3   :  { %3859 = vpow2.f32 %v3152_v54 }
 0x3ad   :  { %v3860_v55 = vpop.eup %3859 }
 0x3ae   :  { %v256_v56 = vadd.f32 1.0, %v3860_v55 }
 0x3b0   :  { %3861 = vrcp.f32 %v256_v56 }
 0x3ba   :  { %v3862_v57 = vpop.eup %3861 }
 0x3bb   :  { %3406 = vmatmul.mubr.msk.f32.vlgmr.msra.gmra.mrb[2].mxu1 %vm55_vm4, %v3862_v57 }
 0x3bc   :  { %3719 = vmatpush3.bf16.msra.mxu1 %v4059_v5  ;;  %3429 = vmatprep.mubr.msk.f32.mxu1 %vm3985_vm0, %v3986_v4 }
 0x3bd   :  { %3720 = vmatprep.subr.bf16.mxu1 %v3984_v0 }
 0x3c0   :  { %3722 = vmatpush3.bf16.msra.mxu1 %v4070_v7 }
 0x3c1   :  { %3427 = vmatprep.subr.mxu1 %v3986_v4 }
 0x3c4   :  { %3428 = vmatpush3.msk.msra.mxu1 %vm63_vm2, %v4078_v8 }
 0x3c5   :  { %3443 = vmatprep.subr.mxu1 %v3986_v4 }
 0x48e   :  { %v331_v2 = vpop.f32.mrb[2].mxu1 }
 0x48f   :  { %v402_v3 = vadd.f32 %v401_v50, %v331_v2  ;;  %v3407_v6 = vpop.f32.mrb[3].mxu1 }
 0x491   :  { %v412_v10 = vadd.f32 %v410_v1, %v402_v3 }
 0x493   :  { %v419_v11 = vadd.f32 %v4199_v9, %v412_v10  ;;  %v797_v10 = vrot.slane %v4190_v61, %v4193_v63 }
 0x495   :  { %v3157_v12 = vmul.f32 -1.442695, %v419_v11 }
 0x497   :  { %3863 = vpow2.f32 %v3157_v12 }
 0x4a1   :  { %v3864_v13 = vpop.eup %3863 }
 0x4a2   :  { %v423_v14 = vadd.f32 1.0, %v3864_v13 }
 0x4a4   :  { %3865 = vrcp.f32 %v423_v14 }
 0x4ae   :  { %v3866_v15 = vpop.eup %3865 }
 0x4af   :  { %v426_v17 = vmul.f32 0.7889279, %v3866_v15 }
 0x4b1   :  { %v427_v21 = vadd.f32 0.010553604, %v426_v17 }
 0x4b3   :  { %vm429_vm8 = vcmp.lt.f32.partialorder %v428_v19, %v427_v21 }
 0x4b4   :  { %vm433_vm10 = vmand %vm429_vm8, %vm432_vm6 }
 0x4b5   :  { %v434_v22 = vsel %vm433_vm10, %v3862_v57, %v430_v16  ;;  %vm447_vm11 = vmand %vm446_vm7, %vm429_vm8 }
 0x4b6   :  { %435 = vst.msk [vmem:[#allocation4] sm:$0xff] %vm55_vm4, %v434_v22  ;;  %v448_v23 = vsel %vm447_vm11, 0.0, %v431_v18  ;;  %vm441_vm12 = vmand %vm429_vm8, %vm440_vm9  ;;  %v3168_v22 = vld [vmem:[%s4618_s1 + $0x8] sm:$0xff] }
 0x4b7   :  { %449 = vst.msk [vmem:[#allocation5] sm:$0xff] %vm55_vm4, %v448_v23  ;;  %v445_v24 = vsel %vm441_vm12, 1.0, %v4151_v42  ;;  %v545_v42 = vpop.permute.xlu0 %544 }
 0x4b8   :  { %453 = vrot.lane.b32.xlu1 %v445_v24, %s3988_s26 }
 0x4be   :  { %v813_v24 = vld [vmem:[#allocation5] sm:$0xff] }
 0x4bf   :  { %vm828_vm7 = vcmp.eq.f32.partialorder %v813_v24, -1.0 }
 0x52a   :  { %v454_v25 = vpop.permute.xlu1 %453 }
 0x52b   :  { %457 = vst.msk [vmem:[#allocation2] sm:$0xff] %vm456_vm13, %v454_v25  ;;  %v812_v25 = vld [vmem:[#allocation4] sm:$0xff] }
 0x52c   :  { %vm814_vm8 = vcmp.eq.f32.partialorder %v812_v25, 0.0 }
 0x532   :  { %v458_v26 = vld [vmem:[#allocation2] sm:$0xff] }
 0x533   :  { %3430 = vmatmul.mubr.msk.f32.vlgmr.msra.gmra.mrb[4].mxu1 %vm51_vm1, %v458_v26  ;;  %vm818_vm14 = vcmp.eq.f32.partialorder %v458_v26, 0.0 }
 0x534   :  { %3444 = vmatpush3.msk.msra.mxu1 %vm63_vm2, %v4160_v45  ;;  %3445 = vmatprep.mubr.msk.f32.mxu1 %vm3985_vm0, %v3986_v4  ;;  %v819_v50 = vsel %vm818_vm14, 1, %v3990_v46 }
 0x535   :  { %3735 = vmatprep.subr.bf16.mxu1 %v3984_v0 }
 0x606   :  { %v530_v28 = vpop.f32.mrb[4].mxu1 }
 0x607   :  { %v534_v29 = vadd.f32 %v3158_v27, %v530_v28  ;;  %v3431_v31 = vpop.f32.mrb[5].mxu1 }
 0x609   :  { %3867 = vtanh.f32 %v534_v29  ;;  %v3161_v33 = vmul.f32 -1.442695, %v534_v29 }
 0x60b   :  { %3869 = vpow2.f32 %v3161_v33 }
 0x613   :  { %v3868_v32 = vpop.eup %3867 }
 0x614   :  { %549 = vrot.lane.b32.xlu1 %v3868_v32, %s3987_s25  ;;  %v3169_v32 = vld [vmem:[%s4611_s0 + $0x10] sm:$0xff] }
 0x615   :  { %v3870_v35 = vpop.eup %3869 }
 0x616   :  { %v538_v36 = vadd.f32 1.0, %v3870_v35 }
 0x618   :  { %3871 = vrcp.f32 %v538_v36 }
 0x622   :  { %v3872_v39 = vpop.eup %3871 }
 0x623   :  { %v547_v43 = vmul.f32 %v3872_v39, %v545_v42 }
 0x686   :  { %v550_v40 = vpop.permute.xlu1 %549 }
 0x687   :  { %v552_v41 = vmul.f32 %v3872_v39, %v550_v40 }
 0x689   :  { %554 = vrot.lane.b32.xlu1 %v552_v41, %s3988_s26 }
 0x6fb   :  { %v555_v44 = vpop.permute.xlu1 %554 }
 0x6fc   :  { %v557_v47 = vadd.f32 %v555_v44, %v547_v43 }
 0x6fe   :  { %3873 = vtanh.f32 %v557_v47 }
 0x708   :  { %v3874_v49 = vpop.eup %3873 }
 0x709   :  { %560 = vrot.lane.b32.xlu0 %v3874_v49, %s3987_s25 }
 0x70d   :  { %820 = vrot.lane.b32.xlu0 %v819_v50, %s3989_s3 }
 0x77b   :  { %v561_v51 = vpop.permute.xlu0 %560 }
 0x77c   :  { %v563_v52 = vmul.f32 %v3872_v39, %v561_v51 }
 0x77e   :  { %570 = vrot.lane.b32.xlu1 %v563_v52, %s3988_s26 }
 0x77f   :  { %v821_v21 = vpop.permute.xlu0 %820 }
 0x780   :  { %vm822_vm15 = vcmp.ne.s32.totalorder %v821_v21, 0 }
 0x782   :  { %824 = vrot.lane.b32.xlu1 %v458_v26, %s3989_s3 }
 0x786   :  { %565 = vrot.lane.b32.xlu1 %v557_v47, %s3989_s3 }
 0x7f0   :  { %v571_v53 = vpop.permute.xlu1 %570 }
 0x7f1   :  { %833 = vst.msk [vmem:[#allocation2] sm:$0xff] %vm53_vm3, %v571_v53  ;;  %3441 = vmatmul.mubr.msk.f32.vlgmr.msra.gmra.mrb[4].mxu0 %vm53_vm3, %v571_v53 }
 0x7f2   :  { %3731 = vmatpush3.bf16.msra.mxu0 %v4118_v34  ;;  %3456 = vmatprep.mubr.msk.f32.mxu0 %vm3985_vm0, %v3986_v4 }
 0x7f3   :  { %3732 = vmatprep.subr.bf16.mxu0 %v3984_v0 }
 0x7f4   :  { %v825_v54 = vpop.permute.xlu1 %824 }
 0x7f6   :  { %3734 = vmatpush3.bf16.msra.mxu0 %v4131_v38 }
 0x7f7   :  { %3741 = vmatprep.subr.bf16.mxu0 %v3984_v0 }
 0x7f8   :  { %v566_v55 = vpop.permute.xlu1 %565 }
 0x7f9   :  { %3457 = vmatmul.mubr.msk.f32.vlgmr.msra.gmra.mrb[6].mxu0 %vm53_vm3, %v571_v53  ;;  %568 = vst.msk [vmem:[#allocation3] sm:$0xff] %vm53_vm3, %v566_v55 }
 0x7fa   :  { %3743 = vmatpush3.bf16.msra.mxu0 %v4106_v30  ;;  %3480 = vmatprep.mubr.msk.f32.mxu0 %vm3985_vm0, %v3986_v4 }
 0x7fb   :  { %3744 = vmatprep.subr.bf16.mxu0 %v3984_v0 }
 0x7fe   :  { %3746 = vmatpush3.bf16.msra.mxu0 %v4127_v37 }
 0x7ff   :  { %3753 = vmatprep.subr.bf16.mxu0 %v3984_v0 }
 0x800   :  { %v923_v56 = vld [vmem:[#allocation3] sm:$0xff] }
 0x801   :  { %925 = vrot.lane.b32.xlu1 %v923_v56, %s3988_s26 }
 0x873   :  { %v926_v49 = vpop.permute.xlu1 %925 }
 0x8c4   :  { %v640_v57 = vpop.f32.mrb[4].mxu0 }
 0x8c5   :  { %v641_v58 = vadd.f32 %v4173_v48, %v640_v57  ;;  %v3442_v59 = vpop.f32.mrb[5].mxu0 }
 0x8c7   :  { %v3163_v60 = vmul.f32 -1.442695, %v641_v58 }
 0x8c9   :  { %3875 = vpow2.f32 %v3163_v60 }
 0x8cc   :  { %v789_v62 = vpop.f32.mrb[6].mxu0 }
 0x8cd   :  { %v3458_v1 = vpop.f32.mrb[7].mxu0 }
 0x8d3   :  { %v3876_v2 = vpop.eup %3875 }
 0x8d4   :  { %v647_v3 = vadd.f32 1.0, %v3876_v2 }
 0x8d6   :  { %3877 = vrcp.f32 %v647_v3 }
 0x8e0   :  { %v3878_v6 = vpop.eup %3877 }
 0x8e1   :  { %3446 = vmatmul.mubr.msk.f32.vlgmr.msra.gmra.mrb[6].mxu1 %vm55_vm4, %v3878_v6 }
 0x8e2   :  { %3737 = vmatpush3.bf16.msra.mxu1 %v4059_v5  ;;  %3469 = vmatprep.mubr.msk.f32.mxu1 %vm3985_vm0, %v3986_v4 }
 0x8e3   :  { %3738 = vmatprep.subr.bf16.mxu1 %v3984_v0 }
 0x8e6   :  { %3740 = vmatpush3.bf16.msra.mxu1 %v4070_v7 }
 0x8e7   :  { %3467 = vmatprep.subr.mxu1 %v3986_v4 }
 0x8ea   :  { %3468 = vmatpush3.msk.msra.mxu1 %vm63_vm2, %v4078_v8 }
 0x8eb   :  { %3483 = vmatprep.subr.mxu1 %v3986_v4 }
 0x9b4   :  { %v719_v11 = vpop.f32.mrb[6].mxu1 }
 0x9b5   :  { %v790_v12 = vadd.f32 %v789_v62, %v719_v11  ;;  %v3447_v13 = vpop.f32.mrb[7].mxu1 }
 0x9b7   :  { %v799_v14 = vadd.f32 %v797_v10, %v790_v12 }
 0x9b9   :  { %v800_v15 = vadd.f32 %v4199_v9, %v799_v14  ;;  %v1174_v14 = vmul.f32 2.0, %v4190_v61 }
 0x9bb   :  { %v3167_v16 = vmul.f32 -1.442695, %v800_v15  ;;  %v1179_v15 = vrot.slane %v1174_v14, %v4193_v63 }
 0x9bd   :  { %3879 = vpow2.f32 %v3167_v16 }
 0x9c7   :  { %v3880_v17 = vpop.eup %3879 }
 0x9c8   :  { %v804_v18 = vadd.f32 1.0, %v3880_v17 }
 0x9ca   :  { %3881 = vrcp.f32 %v804_v18 }
 0x9d4   :  { %v3882_v19 = vpop.eup %3881 }
 0x9d5   :  { %v807_v20 = vmul.f32 0.7889279, %v3882_v19 }
 0x9d7   :  { %v808_v23 = vadd.f32 0.010553604, %v807_v20 }
 0x9d9   :  { %vm811_vm5 = vcmp.lt.f32.partialorder %v3168_v22, %v808_v23 }
 0x9da   :  { %vm823_vm6 = vmand %vm811_vm5, %vm822_vm15 }
 0x9db   :  { %v827_v26 = vsel %vm823_vm6, 1.0, %v825_v54  ;;  %vm829_vm9 = vmand %vm828_vm7, %vm811_vm5 }
 0x9dc   :  { %v830_v27 = vsel %vm829_vm9, 1.0, %v813_v24  ;;  %835 = vrot.lane.b32.xlu0 %v827_v26, %s3988_s26  ;;  %vm815_vm10 = vmand %vm811_vm5, %vm814_vm8 }
 0x9dd   :  { %831 = vst.msk [vmem:[#allocation5] sm:$0xff] %vm55_vm4, %v830_v27  ;;  %v816_v28 = vsel %vm815_vm10, %v3878_v6, %v812_v25  ;;  %v3179_v27 = vld [vmem:[%s4618_s1 + $0x10] sm:$0xff] }
 0x9de   :  { %817 = vst.msk [vmem:[#allocation4] sm:$0xff] %vm55_vm4, %v816_v28 }
 0xa4e   :  { %v836_v29 = vpop.permute.xlu0 %835 }
 0xa4f   :  { %838 = vst.msk [vmem:[#allocation2] sm:$0xff] %vm456_vm13, %v836_v29  ;;  %v1195_v29 = vld [vmem:[#allocation5] sm:$0xff] }
 0xa50   :  { %vm1210_vm5 = vcmp.eq.f32.partialorder %v1195_v29, -1.0 }
 0xa56   :  { %v839_v31 = vld [vmem:[#allocation2] sm:$0xff] }
 0xa57   :  { %3470 = vmatmul.mubr.msk.f32.vlgmr.msra.gmra.mrb[8].mxu1 %vm51_vm1, %v839_v31  ;;  %vm1200_vm11 = vcmp.eq.f32.partialorder %v839_v31, 0.0 }
 0xa58   :  { %3484 = vmatpush3.msk.msra.mxu1 %vm63_vm2, %v4160_v45  ;;  %3485 = vmatprep.mubr.msk.f32.mxu1 %vm3985_vm0, %v3986_v4  ;;  %v1201_v54 = vsel %vm1200_vm11, 1, %v3990_v46 }
 0xa59   :  { %3747 = vmatprep.subr.bf16.mxu1 %v3984_v0 }
 0xb2a   :  { %v911_v33 = vpop.f32.mrb[8].mxu1 }
 0xb2b   :  { %v915_v35 = vadd.f32 %v3169_v32, %v911_v33  ;;  %v3471_v36 = vpop.f32.mrb[9].mxu1 }
 0xb2d   :  { %3883 = vtanh.f32 %v915_v35  ;;  %v3172_v40 = vmul.f32 -1.442695, %v915_v35 }
 0xb2f   :  { %3885 = vpow2.f32 %v3172_v40  ;;  %v3180_v40 = vld [vmem:[%s4611_s0 + $0x18] sm:$0xff] }
 0xb37   :  { %v3884_v39 = vpop.eup %3883 }
 0xb38   :  { %930 = vrot.lane.b32.xlu0 %v3884_v39, %s3987_s25 }
 0xb39   :  { %v3886_v41 = vpop.eup %3885 }
 0xb3a   :  { %v919_v42 = vadd.f32 1.0, %v3886_v41 }
 0xb3c   :  { %3887 = vrcp.f32 %v919_v42 }
 0xb46   :  { %v3888_v43 = vpop.eup %3887 }
 0xb47   :  { %v928_v50 = vmul.f32 %v3888_v43, %v926_v49 }
 0xbaa   :  { %v931_v44 = vpop.permute.xlu0 %930 }
 0xbab   :  { %v933_v47 = vmul.f32 %v3888_v43, %v931_v44 }
 0xbad   :  { %935 = vrot.lane.b32.xlu0 %v933_v47, %s3988_s26 }
 0xc1f   :  { %v936_v51 = vpop.permute.xlu0 %935 }
 0xc20   :  { %v938_v52 = vadd.f32 %v936_v51, %v928_v50 }
 0xc22   :  { %3889 = vtanh.f32 %v938_v52 }
 0xc2c   :  { %v3890_v53 = vpop.eup %3889 }
 0xc2d   :  { %941 = vrot.lane.b32.xlu1 %v3890_v53, %s3987_s25 }
 0xc31   :  { %1202 = vrot.lane.b32.xlu1 %v1201_v54, %s3989_s3 }
 0xc9f   :  { %v942_v55 = vpop.permute.xlu1 %941 }
 0xca0   :  { %v944_v56 = vmul.f32 %v3888_v43, %v942_v55 }
 0xca2   :  { %951 = vrot.lane.b32.xlu0 %v944_v56, %s3988_s26 }
 0xca3   :  { %v1203_v26 = vpop.permute.xlu1 %1202 }
 0xca4   :  { %vm1204_vm12 = vcmp.ne.s32.totalorder %v1203_v26, 0 }
 0xca6   :  { %1206 = vrot.lane.b32.xlu0 %v839_v31, %s3989_s3  ;;  %v1194_v31 = vld [vmem:[#allocation4] sm:$0xff] }
 0xca7   :  { %vm1196_vm6 = vcmp.eq.f32.partialorder %v1194_v31, 0.0 }
 0xcaa   :  { %946 = vrot.lane.b32.xlu0 %v938_v52, %s3989_s3 }
 0xd14   :  { %v952_v57 = vpop.permute.xlu0 %951 }
 0xd15   :  { %1215 = vst.msk [vmem:[#allocation2] sm:$0xff] %vm53_vm3, %v952_v57  ;;  %3481 = vmatmul.mubr.msk.f32.vlgmr.msra.gmra.mrb[8].mxu0 %vm53_vm3, %v952_v57 }
 0xd16   :  { %3755 = vmatpush3.bf16.msra.mxu0 %v4059_v5  ;;  %3509 = vmatprep.mubr.msk.f32.mxu0 %vm3985_vm0, %v3986_v4 }
 0xd17   :  { %3756 = vmatprep.subr.bf16.mxu0 %v3984_v0 }
 0xd18   :  { %v1207_v58 = vpop.permute.xlu0 %1206 }
 0xd1a   :  { %3758 = vmatpush3.bf16.msra.mxu0 %v4070_v7 }
 0xd1b   :  { %3507 = vmatprep.subr.mxu0 %v3986_v4 }
 0xd1c   :  { %v947_v59 = vpop.permute.xlu0 %946 }
 0xd1d   :  { %949 = vst.msk [vmem:[#allocation3] sm:$0xff] %vm53_vm3, %v947_v59 }
 0xd1e   :  { %3508 = vmatpush3.msk.msra.mxu0 %vm63_vm2, %v4078_v8 }
 0xd1f   :  { %3765 = vmatprep.subr.bf16.mxu0 %v3984_v0 }
 0xd24   :  { %v1305_v60 = vld [vmem:[#allocation3] sm:$0xff] }
 0xd25   :  { %1307 = vrot.lane.b32.xlu0 %v1305_v60, %s3988_s26 }
 0xd97   :  { %v1308_v54 = vpop.permute.xlu0 %1307 }
 0xde8   :  { %v1021_v62 = vpop.f32.mrb[8].mxu0 }
 0xde9   :  { %v1022_v1 = vadd.f32 %v4173_v48, %v1021_v62  ;;  %v3482_v2 = vpop.f32.mrb[9].mxu0 }
 0xdeb   :  { %v3174_v3 = vmul.f32 -1.442695, %v1022_v1 }
 0xded   :  { %3891 = vpow2.f32 %v3174_v3 }
 0xdf7   :  { %v3892_v6 = vpop.eup %3891 }
 0xdf8   :  { %v1028_v10 = vadd.f32 1.0, %v3892_v6 }
 0xdfa   :  { %3893 = vrcp.f32 %v1028_v10 }
 0xe04   :  { %v3894_v11 = vpop.eup %3893 }
 0xe05   :  { %3486 = vmatmul.mubr.msk.f32.vlgmr.msra.gmra.mrb[10].mxu1 %vm55_vm4, %v3894_v11 }
 0xe06   :  { %3749 = vmatpush3.bf16.msra.mxu1 %v4118_v34  ;;  %3496 = vmatprep.mubr.msk.f32.mxu1 %vm3985_vm0, %v3986_v4 }
 0xe07   :  { %3750 = vmatprep.subr.bf16.mxu1 %v3984_v0 }
 0xe0a   :  { %3752 = vmatpush3.bf16.msra.mxu1 %v4131_v38 }
 0xe0b   :  { %3759 = vmatprep.subr.bf16.mxu1 %v3984_v0 }
 0xe0d   :  { %3497 = vmatmul.mubr.msk.f32.vlgmr.msra.gmra.mrb[12].mxu1 %vm53_vm3, %v952_v57 }
 0xe0e   :  { %3761 = vmatpush3.bf16.msra.mxu1 %v4106_v30  ;;  %3520 = vmatprep.mubr.msk.f32.mxu1 %vm3985_vm0, %v3986_v4 }
 0xe0f   :  { %3762 = vmatprep.subr.bf16.mxu1 %v3984_v0 }
 0xe12   :  { %3764 = vmatpush3.bf16.msra.mxu1 %v4127_v37 }
 0xe13   :  { %3523 = vmatprep.subr.mxu1 %v3986_v4 }
 0xed8   :  { %v1100_v12 = vpop.f32.mrb[10].mxu1 }
 0xed9   :  { %v3487_v13 = vpop.f32.mrb[11].mxu1 }
 0xee0   :  { %v1170_v16 = vpop.f32.mrb[12].mxu1 }
 0xee1   :  { %v1171_v17 = vadd.f32 %v1170_v16, %v1100_v12  ;;  %v3498_v18 = vpop.f32.mrb[13].mxu1 }
 0xee3   :  { %v1181_v19 = vadd.f32 %v1179_v15, %v1171_v17 }
 0xee5   :  { %v1182_v20 = vadd.f32 %v4199_v9, %v1181_v19  ;;  %v1556_v19 = vmul.f32 3.0, %v4190_v61 }
 0xee7   :  { %v3178_v21 = vmul.f32 -1.442695, %v1182_v20  ;;  %v1561_v20 = vrot.slane %v1556_v19, %v4193_v63 }
 0xee9   :  { %3895 = vpow2.f32 %v3178_v21 }
 0xef3   :  { %v3896_v22 = vpop.eup %3895 }
 0xef4   :  { %v1186_v23 = vadd.f32 1.0, %v3896_v22 }
 0xef6   :  { %3897 = vrcp.f32 %v1186_v23 }
 0xf00   :  { %v3898_v24 = vpop.eup %3897 }
 0xf01   :  { %v1189_v25 = vmul.f32 0.7889279, %v3898_v24 }
 0xf03   :  { %v1190_v28 = vadd.f32 0.010553604, %v1189_v25 }
 0xf05   :  { %vm1193_vm14 = vcmp.lt.f32.partialorder %v3179_v27, %v1190_v28 }
 0xf06   :  { %vm1205_vm15 = vmand %vm1193_vm14, %vm1204_vm12 }
 0xf07   :  { %v1209_v32 = vsel %vm1205_vm15, 1.0, %v1207_v58  ;;  %vm1211_vm7 = vmand %vm1210_vm5, %vm1193_vm14 }
 0xf08   :  { %v1212_v33 = vsel %vm1211_vm7, 2.0, %v1195_v29  ;;  %1217 = vrot.lane.b32.xlu1 %v1209_v32, %s3988_s26  ;;  %vm1197_vm8 = vmand %vm1193_vm14, %vm1196_vm6  ;;  %v3190_v32 = vld [vmem:[%s4618_s1 + $0x18] sm:$0xff] }
 0xf09   :  { %1213 = vst.msk [vmem:[#allocation5] sm:$0xff] %vm55_vm4, %v1212_v33  ;;  %v1198_v35 = vsel %vm1197_vm8, %v3894_v11, %v1194_v31 }
 0xf0a   :  { %1199 = vst.msk [vmem:[#allocation4] sm:$0xff] %vm55_vm4, %v1198_v35 }
 0xf10   :  { %v1577_v35 = vld [vmem:[#allocation5] sm:$0xff] }
 0xf11   :  { %vm1592_vm14 = vcmp.eq.f32.partialorder %v1577_v35, -1.0 }
 0xf7a   :  { %v1218_v36 = vpop.permute.xlu1 %1217 }
 0xf7b   :  { %1220 = vst.msk [vmem:[#allocation2] sm:$0xff] %vm456_vm13, %v1218_v36  ;;  %v1576_v36 = vld [vmem:[#allocation4] sm:$0xff] }
 0xf7c   :  { %vm1578_vm15 = vcmp.eq.f32.partialorder %v1576_v36, 0.0 }
 0xf82   :  { %v1221_v39 = vld [vmem:[#allocation2] sm:$0xff] }
 0xf83   :  { %3510 = vmatmul.mubr.msk.f32.vlgmr.msra.gmra.mrb[10].mxu0 %vm51_vm1, %v1221_v39  ;;  %vm1582_vm9 = vcmp.eq.f32.partialorder %v1221_v39, 0.0 }
 0xf84   :  { %3767 = vmatpush3.bf16.msra.mxu0 %v4118_v34  ;;  %3536 = vmatprep.mubr.msk.f32.mxu0 %vm3985_vm0, %v3986_v4  ;;  %v1583_v59 = vsel %vm1582_vm9, 1, %v3990_v46 }
 0xf85   :  { %3768 = vmatprep.subr.bf16.mxu0 %v3984_v0 }
 0xf88   :  { %3770 = vmatpush3.bf16.msra.mxu0 %v4131_v38 }
 0xf89   :  { %3777 = vmatprep.subr.bf16.mxu0 %v3984_v0 }
0x1056   :  { %v1293_v41 = vpop.f32.mrb[10].mxu0 }
0x1057   :  { %v1297_v42 = vadd.f32 %v3180_v40, %v1293_v41  ;;  %v3511_v43 = vpop.f32.mrb[11].mxu0 }
0x1059   :  { %3899 = vtanh.f32 %v1297_v42  ;;  %v3183_v47 = vmul.f32 -1.442695, %v1297_v42 }
0x105b   :  { %3901 = vpow2.f32 %v3183_v47 }
0x1063   :  { %v3900_v44 = vpop.eup %3899 }
0x1064   :  { %1312 = vrot.lane.b32.xlu1 %v3900_v44, %s3987_s25  ;;  %v3191_v44 = vld [vmem:[%s4611_s0 + $0x20] sm:$0xff] }
0x1065   :  { %v3902_v49 = vpop.eup %3901 }
0x1066   :  { %v1301_v50 = vadd.f32 1.0, %v3902_v49 }
0x1068   :  { %3903 = vrcp.f32 %v1301_v50 }
0x1072   :  { %v3904_v51 = vpop.eup %3903 }
0x1073   :  { %v1310_v55 = vmul.f32 %v3904_v51, %v1308_v54 }
0x10d6   :  { %v1313_v52 = vpop.permute.xlu1 %1312 }
0x10d7   :  { %v1315_v53 = vmul.f32 %v3904_v51, %v1313_v52 }
0x10d9   :  { %1317 = vrot.lane.b32.xlu1 %v1315_v53, %s3988_s26 }
0x114b   :  { %v1318_v56 = vpop.permute.xlu1 %1317 }
0x114c   :  { %v1320_v57 = vadd.f32 %v1318_v56, %v1310_v55 }
0x114e   :  { %3905 = vtanh.f32 %v1320_v57 }
0x1158   :  { %v3906_v58 = vpop.eup %3905 }
0x1159   :  { %1323 = vrot.lane.b32.xlu0 %v3906_v58, %s3987_s25 }
0x115d   :  { %1584 = vrot.lane.b32.xlu0 %v1583_v59, %s3989_s3 }
0x11cb   :  { %v1324_v60 = vpop.permute.xlu0 %1323 }
0x11cc   :  { %v1326_v62 = vmul.f32 %v3904_v51, %v1324_v60 }
0x11ce   :  { %1333 = vrot.lane.b32.xlu1 %v1326_v62, %s3988_s26 }
0x11d2   :  { %1588 = vrot.lane.b32.xlu1 %v1221_v39, %s3989_s3 }
0x11d6   :  { %1328 = vrot.lane.b32.xlu1 %v1320_v57, %s3989_s3 }
0x1240   :  { %v1334_v1 = vpop.permute.xlu1 %1333 }
0x1241   :  { %1597 = vst.msk [vmem:[#allocation2] sm:$0xff] %vm53_vm3, %v1334_v1  ;;  %3521 = vmatmul.mubr.msk.f32.vlgmr.msra.gmra.mrb[14].mxu1 %vm53_vm3, %v1334_v1  ;;  %3537 = vmatmul.mubr.msk.f32.vlgmr.msra.gmra.mrb[12].mxu0 %vm53_vm3, %v1334_v1 }
0x1242   :  { %3524 = vmatpush3.msk.msra.mxu1 %vm63_vm2, %v4160_v45  ;;  %3525 = vmatprep.mubr.msk.f32.mxu1 %vm3985_vm0, %v3986_v4 }
0x1243   :  { %3771 = vmatprep.subr.bf16.mxu1 %v3984_v0  ;;  %3779 = vmatpush3.bf16.msra.mxu0 %v4106_v30 }
0x1244   :  { %v1589_v2 = vpop.permute.xlu1 %1588  ;;  %3780 = vmatprep.subr.bf16.mxu0 %v3984_v0  ;;  %3560 = vmatprep.mubr.msk.f32.mxu0 %vm3985_vm0, %v3986_v4 }
0x1247   :  { %3782 = vmatpush3.bf16.msra.mxu0 %v4127_v37 }
0x1248   :  { %v1329_v3 = vpop.permute.xlu1 %1328  ;;  %3789 = vmatprep.subr.bf16.mxu0 %v3984_v0 }
0x1249   :  { %1331 = vst.msk [vmem:[#allocation3] sm:$0xff] %vm53_vm3, %v1329_v3 }
0x1250   :  { %v1687_v6 = vld [vmem:[#allocation3] sm:$0xff] }
0x1251   :  { %1689 = vrot.lane.b32.xlu1 %v1687_v6, %s3988_s26 }
0x12c3   :  { %v1690_v58 = vpop.permute.xlu1 %1689 }
0x1314   :  { %v1403_v10 = vpop.f32.mrb[14].mxu1  ;;  %v1552_v11 = vpop.f32.mrb[12].mxu0 }
0x1315   :  { %v1404_v12 = vadd.f32 %v4173_v48, %v1403_v10  ;;  %v3522_v13 = vpop.f32.mrb[15].mxu1  ;;  %v3538_v14 = vpop.f32.mrb[13].mxu0 }
0x1316   :  { %v4404_v13 = vld [vmem:[%s4610_s2 + $0x20] sm:$0xf] }
0x1317   :  { %v3185_v15 = vmul.f32 -1.442695, %v1404_v12 }
0x1319   :  { %3907 = vpow2.f32 %v3185_v15 }
0x1323   :  { %v3908_v16 = vpop.eup %3907 }
0x1324   :  { %v1410_v17 = vadd.f32 1.0, %v3908_v16 }
0x1326   :  { %3909 = vrcp.f32 %v1410_v17 }
0x1330   :  { %v3910_v18 = vpop.eup %3909 }
0x1331   :  { %3526 = vmatmul.mubr.msk.f32.vlgmr.msra.gmra.mrb[16].mxu1 %vm55_vm4, %v3910_v18 }
0x1332   :  { %3773 = vmatpush3.bf16.msra.mxu1 %v4059_v5  ;;  %3549 = vmatprep.mubr.msk.f32.mxu1 %vm3985_vm0, %v3986_v4 }
0x1333   :  { %3774 = vmatprep.subr.bf16.mxu1 %v3984_v0 }
0x1336   :  { %3776 = vmatpush3.bf16.msra.mxu1 %v4070_v7 }
0x1337   :  { %3547 = vmatprep.subr.mxu1 %v3986_v4 }
0x133a   :  { %3548 = vmatpush3.msk.msra.mxu1 %vm63_vm2, %v4078_v8  ;;  %v1585_v8 = vpop.permute.xlu0 %1584 }
0x133b   :  { %3563 = vmatprep.subr.mxu1 %v3986_v4  ;;  %vm1586_vm10 = vcmp.ne.s32.totalorder %v1585_v8, 0 }
0x1404   :  { %v1482_v21 = vpop.f32.mrb[16].mxu1 }
0x1405   :  { %v1553_v22 = vadd.f32 %v1552_v11, %v1482_v21  ;;  %v3527_v23 = vpop.f32.mrb[17].mxu1 }
0x1406   :  { %v1938_v23 = vmul.f32 4.0, %v4190_v61  ;;  %v3201_v61 = vld [vmem:[%s4618_s1 + $0x20] sm:$0xff] }
0x1407   :  { %v1563_v24 = vadd.f32 %v1561_v20, %v1553_v22 }
0x1409   :  { %v1564_v25 = vadd.f32 %v4199_v9, %v1563_v24  ;;  %v1943_v24 = vrot.slane %v1938_v23, %v4193_v63 }
0x140b   :  { %v3189_v26 = vmul.f32 -1.442695, %v1564_v25 }
0x140d   :  { %3911 = vpow2.f32 %v3189_v26 }
0x1417   :  { %v3912_v27 = vpop.eup %3911 }
0x1418   :  { %v1568_v28 = vadd.f32 1.0, %v3912_v27 }
0x141a   :  { %3913 = vrcp.f32 %v1568_v28 }
0x1424   :  { %v3914_v29 = vpop.eup %3913 }
0x1425   :  { %v1571_v31 = vmul.f32 0.7889279, %v3914_v29 }
0x1427   :  { %v1572_v33 = vadd.f32 0.010553604, %v1571_v31 }
0x1429   :  { %vm1575_vm11 = vcmp.lt.f32.partialorder %v3190_v32, %v1572_v33 }
0x142a   :  { %vm1587_vm12 = vmand %vm1575_vm11, %vm1586_vm10 }
0x142b   :  { %v1591_v39 = vsel %vm1587_vm12, 1.0, %v1589_v2  ;;  %vm1593_vm5 = vmand %vm1592_vm14, %vm1575_vm11 }
0x142c   :  { %v1594_v40 = vsel %vm1593_vm5, 3.0, %v1577_v35  ;;  %1599 = vrot.lane.b32.xlu0 %v1591_v39, %s3988_s26  ;;  %vm1579_vm6 = vmand %vm1575_vm11, %vm1578_vm15 }
0x142d   :  { %1595 = vst.msk [vmem:[#allocation5] sm:$0xff] %vm55_vm4, %v1594_v40  ;;  %v1580_v41 = vsel %vm1579_vm6, %v3910_v18, %v1576_v36 }
0x142e   :  { %1581 = vst.msk [vmem:[#allocation4] sm:$0xff] %vm55_vm4, %v1580_v41 }
0x1434   :  { %v1959_v40 = vld [vmem:[#allocation5] sm:$0xff] }
0x1435   :  { %v1958_v41 = vld [vmem:[#allocation4] sm:$0xff]  ;;  %vm1974_vm11 = vcmp.eq.f32.partialorder %v1959_v40, -1.0 }
0x1436   :  { %vm1960_vm12 = vcmp.eq.f32.partialorder %v1958_v41, 0.0 }
0x149e   :  { %v1600_v42 = vpop.permute.xlu0 %1599 }
0x149f   :  { %1602 = vst.msk [vmem:[#allocation2] sm:$0xff] %vm456_vm13, %v1600_v42 }
0x14a6   :  { %v1603_v43 = vld [vmem:[#allocation2] sm:$0xff] }
0x14a7   :  { %3550 = vmatmul.mubr.msk.f32.vlgmr.msra.gmra.mrb[18].mxu1 %vm51_vm1, %v1603_v43  ;;  %vm1964_vm7 = vcmp.eq.f32.partialorder %v1603_v43, 0.0 }
0x14a8   :  { %3564 = vmatpush3.msk.msra.mxu1 %vm63_vm2, %v4160_v45  ;;  %3565 = vmatprep.mubr.msk.f32.mxu1 %vm3985_vm0, %v3986_v4  ;;  %v1965_v2 = vsel %vm1964_vm7, 1, %v3990_v46 }
0x14a9   :  { %3783 = vmatprep.subr.bf16.mxu1 %v3984_v0 }
0x157a   :  { %v1675_v47 = vpop.f32.mrb[18].mxu1 }
0x157b   :  { %v1679_v49 = vadd.f32 %v3191_v44, %v1675_v47  ;;  %v3551_v50 = vpop.f32.mrb[19].mxu1 }
0x157d   :  { %3915 = vtanh.f32 %v1679_v49  ;;  %v3194_v52 = vmul.f32 -1.442695, %v1679_v49  ;;  %v3202_v49 = vld [vmem:[%s4611_s0 + $0x28] sm:$0xff] }
0x157f   :  { %3917 = vpow2.f32 %v3194_v52 }
0x1587   :  { %v3916_v51 = vpop.eup %3915 }
0x1588   :  { %1694 = vrot.lane.b32.xlu0 %v3916_v51, %s3987_s25 }
0x1589   :  { %v3918_v53 = vpop.eup %3917 }
0x158a   :  { %v1683_v54 = vadd.f32 1.0, %v3918_v53 }
0x158c   :  { %3919 = vrcp.f32 %v1683_v54 }
0x1596   :  { %v3920_v55 = vpop.eup %3919 }
0x1597   :  { %v1692_v59 = vmul.f32 %v3920_v55, %v1690_v58 }
0x15fa   :  { %v1695_v56 = vpop.permute.xlu0 %1694 }
0x15fb   :  { %v1697_v57 = vmul.f32 %v3920_v55, %v1695_v56 }
0x15fd   :  { %1699 = vrot.lane.b32.xlu0 %v1697_v57, %s3988_s26 }
0x166f   :  { %v1700_v60 = vpop.permute.xlu0 %1699 }
0x1670   :  { %v1702_v62 = vadd.f32 %v1700_v60, %v1692_v59 }
0x1672   :  { %3921 = vtanh.f32 %v1702_v62 }
0x167c   :  { %v3922_v1 = vpop.eup %3921 }
0x167d   :  { %1705 = vrot.lane.b32.xlu1 %v3922_v1, %s3987_s25 }
0x1681   :  { %1966 = vrot.lane.b32.xlu1 %v1965_v2, %s3989_s3 }
0x16ef   :  { %v1706_v3 = vpop.permute.xlu1 %1705 }
0x16f0   :  { %v1708_v6 = vmul.f32 %v3920_v55, %v1706_v3 }
0x16f2   :  { %1715 = vrot.lane.b32.xlu0 %v1708_v6, %s3988_s26 }
0x16f3   :  { %v1967_v36 = vpop.permute.xlu1 %1966 }
0x16f4   :  { %vm1968_vm8 = vcmp.ne.s32.totalorder %v1967_v36, 0 }
0x16f6   :  { %1970 = vrot.lane.b32.xlu0 %v1603_v43, %s3989_s3 }
0x16fa   :  { %1710 = vrot.lane.b32.xlu0 %v1702_v62, %s3989_s3 }
0x1764   :  { %v1716_v10 = vpop.permute.xlu0 %1715 }
0x1765   :  { %1979 = vst.msk [vmem:[#allocation2] sm:$0xff] %vm53_vm3, %v1716_v10  ;;  %3561 = vmatmul.mubr.msk.f32.vlgmr.msra.gmra.mrb[14].mxu0 %vm53_vm3, %v1716_v10 }
0x1766   :  { %3791 = vmatpush3.bf16.msra.mxu0 %v4059_v5  ;;  %3589 = vmatprep.mubr.msk.f32.mxu0 %vm3985_vm0, %v3986_v4 }
0x1767   :  { %3792 = vmatprep.subr.bf16.mxu0 %v3984_v0 }
0x1768   :  { %v1971_v11 = vpop.permute.xlu0 %1970 }
0x176a   :  { %3794 = vmatpush3.bf16.msra.mxu0 %v4070_v7 }
0x176b   :  { %3587 = vmatprep.subr.mxu0 %v3986_v4 }
0x176c   :  { %v1711_v12 = vpop.permute.xlu0 %1710 }
0x176d   :  { %1713 = vst.msk [vmem:[#allocation3] sm:$0xff] %vm53_vm3, %v1711_v12 }
0x176e   :  { %3588 = vmatpush3.msk.msra.mxu0 %vm63_vm2, %v4404_v13 }
0x176f   :  { %3603 = vmatprep.subr.mxu0 %v3986_v4 }
0x1774   :  { %v2069_v14 = vld [vmem:[#allocation3] sm:$0xff] }
0x1775   :  { %2071 = vrot.lane.b32.xlu0 %v2069_v14, %s3988_s26 }
0x17e7   :  { %v2072_v59 = vpop.permute.xlu0 %2071 }
0x1838   :  { %v1785_v15 = vpop.f32.mrb[14].mxu0 }
0x1839   :  { %v1786_v16 = vadd.f32 %v4173_v48, %v1785_v15  ;;  %v3562_v17 = vpop.f32.mrb[15].mxu0 }
0x183a   :  { %v4468_v17 = vld [vmem:[%s4615_s4] ss:$0 sm:$0xff] }
0x183b   :  { %v3196_v18 = vmul.f32 -1.442695, %v1786_v16 }
0x183d   :  { %3923 = vpow2.f32 %v3196_v18 }
0x1847   :  { %v3924_v19 = vpop.eup %3923 }
0x1848   :  { %v1792_v20 = vadd.f32 1.0, %v3924_v19 }
0x184a   :  { %3925 = vrcp.f32 %v1792_v20 }
0x1854   :  { %v3926_v21 = vpop.eup %3925 }
0x1855   :  { %3566 = vmatmul.mubr.msk.f32.vlgmr.msra.gmra.mrb[20].mxu1 %vm55_vm4, %v3926_v21 }
0x1856   :  { %3785 = vmatpush3.bf16.msra.mxu1 %v4118_v34  ;;  %3576 = vmatprep.mubr.msk.f32.mxu1 %vm3985_vm0, %v3986_v4 }
0x1857   :  { %3786 = vmatprep.subr.bf16.mxu1 %v3984_v0 }
0x185a   :  { %3788 = vmatpush3.bf16.msra.mxu1 %v4131_v38 }
0x185b   :  { %3795 = vmatprep.subr.bf16.mxu1 %v3984_v0 }
0x185d   :  { %3577 = vmatmul.mubr.msk.f32.vlgmr.msra.gmra.mrb[22].mxu1 %vm53_vm3, %v1716_v10 }
0x185e   :  { %3797 = vmatpush3.bf16.msra.mxu1 %v4106_v30  ;;  %3600 = vmatprep.mubr.msk.f32.mxu1 %vm3985_vm0, %v3986_v4 }
0x185f   :  { %3798 = vmatprep.subr.bf16.mxu1 %v3984_v0 }
0x1862   :  { %3800 = vmatpush3.bf16.msra.mxu1 %v4127_v37 }
0x1863   :  { %3807 = vmatprep.subr.bf16.mxu1 %v3984_v0 }
0x1928   :  { %v1864_v48 = vpop.f32.mrb[20].mxu1 }
0x1929   :  { %v3567_v22 = vpop.f32.mrb[21].mxu1 }
0x1930   :  { %v1934_v25 = vpop.f32.mrb[22].mxu1 }
0x1931   :  { %v1935_v26 = vadd.f32 %v1934_v25, %v1864_v48  ;;  %v3578_v27 = vpop.f32.mrb[23].mxu1  ;;  %v4488_v25 = vld [vmem:[%s4616_s7] sm:$0x1] }
0x1933   :  { %v1945_v28 = vadd.f32 %v1943_v24, %v1935_v26  ;;  %v2320_v26 = vmul.f32 5.0, %v4488_v25 }
0x1935   :  { %v1946_v29 = vadd.f32 %v4199_v9, %v1945_v28  ;;  %v2325_v27 = vrot.slane %v2320_v26, %v4193_v63 }
0x1937   :  { %v3200_v31 = vmul.f32 -1.442695, %v1946_v29 }
0x1939   :  { %3927 = vpow2.f32 %v3200_v31 }
0x1943   :  { %v3928_v8 = vpop.eup %3927 }
0x1944   :  { %v1950_v32 = vadd.f32 1.0, %v3928_v8 }
0x1946   :  { %3929 = vrcp.f32 %v1950_v32  ;;  %v4495_v32 = vld [vmem:[%s4617_s8] ss:$0 sm:$0xff] }
0x1950   :  { %v3930_v33 = vpop.eup %3929 }
0x1951   :  { %v1953_v35 = vmul.f32 0.7889279, %v3930_v33 }
0x1953   :  { %v1954_v39 = vadd.f32 0.010553604, %v1953_v35 }
0x1955   :  { %vm1957_vm9 = vcmp.lt.f32.partialorder %v3201_v61, %v1954_v39 }
0x1956   :  { %vm1969_vm10 = vmand %vm1957_vm9, %vm1968_vm8 }
0x1957   :  { %v1973_v9 = vsel %vm1969_vm10, 1.0, %v1971_v11  ;;  %vm1975_vm14 = vmand %vm1974_vm11, %vm1957_vm9 }
0x1958   :  { %v1976_v42 = vsel %vm1975_vm14, 4.0, %v1959_v40  ;;  %1981 = vrot.lane.b32.xlu1 %v1973_v9, %s3988_s26  ;;  %vm1961_vm15 = vmand %vm1957_vm9, %vm1960_vm12  ;;  %v3212_v9 = vld [vmem:[%s4618_s1 + $0x28] sm:$0xff] }
0x1959   :  { %1977 = vst.msk [vmem:[#allocation5] sm:$0xff] %vm55_vm4, %v1976_v42  ;;  %v1962_v43 = vsel %vm1961_vm15, %v3926_v21, %v1958_v41 }
0x195a   :  { %1963 = vst.msk [vmem:[#allocation4] sm:$0xff] %vm55_vm4, %v1962_v43 }
0x1960   :  { %v2341_v43 = vld [vmem:[#allocation5] sm:$0xff] }
0x1961   :  { %vm2356_vm9 = vcmp.eq.f32.partialorder %v2341_v43, -1.0 }
0x19ca   :  { %v1982_v44 = vpop.permute.xlu1 %1981 }
0x19cb   :  { %1984 = vst.msk [vmem:[#allocation2] sm:$0xff] %vm456_vm13, %v1982_v44  ;;  %v2340_v44 = vld [vmem:[#allocation4] sm:$0xff] }
0x19cc   :  { %vm2342_vm10 = vcmp.eq.f32.partialorder %v2340_v44, 0.0 }
0x19d2   :  { %v1985_v47 = vld [vmem:[#allocation2] sm:$0xff] }
0x19d3   :  { %3590 = vmatmul.mubr.msk.f32.vlgmr.msra.gmra.mrb[16].mxu0 %vm51_vm1, %v1985_v47  ;;  %vm2346_vm5 = vcmp.eq.f32.partialorder %v1985_v47, 0.0 }
0x19d4   :  { %3604 = vmatpush3.msk.msra.mxu0 %vm63_vm2, %v4160_v45  ;;  %3605 = vmatprep.mubr.msk.f32.mxu0 %vm3985_vm0, %v3986_v4  ;;  %v2347_v3 = vsel %vm2346_vm5, 1, %v3990_v46 }
0x19d5   :  { %3801 = vmatprep.subr.bf16.mxu0 %v3984_v0 }
0x1aa6   :  { %v2057_v50 = vpop.f32.mrb[16].mxu0 }
0x1aa7   :  { %v2061_v51 = vadd.f32 %v3202_v49, %v2057_v50  ;;  %v3591_v52 = vpop.f32.mrb[17].mxu0 }
0x1aa9   :  { %3931 = vtanh.f32 %v2061_v51  ;;  %v3205_v54 = vmul.f32 -1.442695, %v2061_v51 }
0x1aab   :  { %3933 = vpow2.f32 %v3205_v54  ;;  %v3213_v54 = vld [vmem:[%s4611_s0 + $0x30] sm:$0xff] }
0x1ab3   :  { %v3932_v53 = vpop.eup %3931 }
0x1ab4   :  { %2076 = vrot.lane.b32.xlu1 %v3932_v53, %s3987_s25  ;;  %v4509_v53 = vld [vmem:[%s4614_s6] sm:$0xf] }
0x1ab5   :  { %v3934_v55 = vpop.eup %3933 }
0x1ab6   :  { %v2065_v45 = vadd.f32 1.0, %v3934_v55 }
0x1ab8   :  { %3935 = vrcp.f32 %v2065_v45 }
0x1ac2   :  { %v3936_v56 = vpop.eup %3935 }
0x1ac3   :  { %v2074_v60 = vmul.f32 %v3936_v56, %v2072_v59 }
0x1b26   :  { %v2077_v57 = vpop.permute.xlu1 %2076 }
0x1b27   :  { %v2079_v58 = vmul.f32 %v3936_v56, %v2077_v57 }
0x1b29   :  { %2081 = vrot.lane.b32.xlu1 %v2079_v58, %s3988_s26 }
0x1b9b   :  { %v2082_v62 = vpop.permute.xlu1 %2081 }
0x1b9c   :  { %v2084_v1 = vadd.f32 %v2082_v62, %v2074_v60 }
0x1b9e   :  { %3937 = vtanh.f32 %v2084_v1 }
0x1ba8   :  { %v3938_v2 = vpop.eup %3937 }
0x1ba9   :  { %2087 = vrot.lane.b32.xlu0 %v3938_v2, %s3987_s25 }
0x1bad   :  { %2348 = vrot.lane.b32.xlu0 %v2347_v3, %s3989_s3 }
0x1c1b   :  { %v2088_v6 = vpop.permute.xlu0 %2087 }
0x1c1c   :  { %v2090_v10 = vmul.f32 %v3936_v56, %v2088_v6 }
0x1c1e   :  { %2097 = vrot.lane.b32.xlu1 %v2090_v10, %s3988_s26 }
0x1c1f   :  { %v2349_v41 = vpop.permute.xlu0 %2348 }
0x1c20   :  { %vm2350_vm6 = vcmp.ne.s32.totalorder %v2349_v41, 0 }
0x1c22   :  { %2352 = vrot.lane.b32.xlu1 %v1985_v47, %s3989_s3 }
0x1c26   :  { %2092 = vrot.lane.b32.xlu1 %v2084_v1, %s3989_s3 }
0x1c90   :  { %v2098_v11 = vpop.permute.xlu1 %2097 }
0x1c91   :  { %2361 = vst.msk [vmem:[#allocation2] sm:$0xff] %vm53_vm3, %v2098_v11  ;;  %3601 = vmatmul.mubr.msk.f32.vlgmr.msra.gmra.mrb[24].mxu1 %vm53_vm3, %v2098_v11 }
0x1c92   :  { %3809 = vmatpush3.bf16.msra.mxu1 %v4059_v5  ;;  %3629 = vmatprep.mubr.msk.f32.mxu1 %vm3985_vm0, %v3986_v4 }
0x1c93   :  { %3810 = vmatprep.subr.bf16.mxu1 %v3984_v0 }
0x1c94   :  { %v2353_v12 = vpop.permute.xlu1 %2352 }
0x1c96   :  { %3812 = vmatpush3.bf16.msra.mxu1 %v4070_v7 }
0x1c97   :  { %3627 = vmatprep.subr.mxu1 %v3986_v4 }
0x1c98   :  { %v2093_v14 = vpop.permute.xlu1 %2092 }
0x1c99   :  { %2095 = vst.msk [vmem:[#allocation3] sm:$0xff] %vm53_vm3, %v2093_v14 }
0x1c9a   :  { %3628 = vmatpush3.msk.msra.mxu1 %vm63_vm2, %v4404_v13 }
0x1c9b   :  { %3643 = vmatprep.subr.mxu1 %v3986_v4 }
0x1ca0   :  { %v2451_v15 = vld [vmem:[#allocation3] sm:$0xff] }
0x1ca1   :  { %2453 = vrot.lane.b32.xlu1 %v2451_v15, %s3988_s26 }
0x1d13   :  { %v2454_v3 = vpop.permute.xlu1 %2453 }
0x1d64   :  { %v2167_v16 = vpop.f32.mrb[24].mxu1 }
0x1d65   :  { %v2168_v18 = vadd.f32 %v4468_v17, %v2167_v16  ;;  %v3602_v19 = vpop.f32.mrb[25].mxu1 }
0x1d67   :  { %v3207_v20 = vmul.f32 -1.442695, %v2168_v18 }
0x1d69   :  { %3939 = vpow2.f32 %v3207_v20 }
0x1d73   :  { %v3940_v21 = vpop.eup %3939 }
0x1d74   :  { %v2174_v48 = vadd.f32 1.0, %v3940_v21 }
0x1d76   :  { %3941 = vrcp.f32 %v2174_v48 }
0x1d80   :  { %v3942_v22 = vpop.eup %3941 }
0x1d81   :  { %3606 = vmatmul.mubr.msk.f32.vlgmr.msra.gmra.mrb[18].mxu0 %vm55_vm4, %v3942_v22 }
0x1d82   :  { %3803 = vmatpush3.bf16.msra.mxu0 %v4118_v34  ;;  %3616 = vmatprep.mubr.msk.f32.mxu0 %vm3985_vm0, %v3986_v4 }
0x1d83   :  { %3804 = vmatprep.subr.bf16.mxu0 %v3984_v0 }
0x1d86   :  { %3806 = vmatpush3.bf16.msra.mxu0 %v4131_v38 }
0x1d87   :  { %3813 = vmatprep.subr.bf16.mxu0 %v3984_v0 }
0x1d89   :  { %3617 = vmatmul.mubr.msk.f32.vlgmr.msra.gmra.mrb[20].mxu0 %vm53_vm3, %v2098_v11 }
0x1d8a   :  { %3815 = vmatpush3.bf16.msra.mxu0 %v4106_v30  ;;  %3640 = vmatprep.mubr.msk.f32.mxu0 %vm3985_vm0, %v3986_v4 }
0x1d8b   :  { %3816 = vmatprep.subr.bf16.mxu0 %v3984_v0 }
0x1d8e   :  { %3818 = vmatpush3.bf16.msra.mxu0 %v4127_v37 }
0x1d8f   :  { %3825 = vmatprep.subr.bf16.mxu0 %v3984_v0 }
0x1e54   :  { %v2246_v23 = vpop.f32.mrb[18].mxu0 }
0x1e55   :  { %v3607_v24 = vpop.f32.mrb[19].mxu0 }
0x1e5c   :  { %v2316_v28 = vpop.f32.mrb[20].mxu0 }
0x1e5d   :  { %v2317_v29 = vadd.f32 %v2316_v28, %v2246_v23  ;;  %v3618_v31 = vpop.f32.mrb[21].mxu0  ;;  %v2702_v28 = vmul.f32 6.0, %v4488_v25 }
0x1e5f   :  { %v2327_v8 = vadd.f32 %v2325_v27, %v2317_v29  ;;  %v2707_v29 = vrot.slane %v2702_v28, %v4193_v63 }
0x1e61   :  { %v2328_v33 = vadd.f32 %v4495_v32, %v2327_v8 }
0x1e63   :  { %v3211_v35 = vmul.f32 -1.442695, %v2328_v33 }
0x1e65   :  { %3943 = vpow2.f32 %v3211_v35 }
0x1e6f   :  { %v3944_v36 = vpop.eup %3943 }
0x1e70   :  { %v2332_v61 = vadd.f32 1.0, %v3944_v36 }
0x1e72   :  { %3945 = vrcp.f32 %v2332_v61 }
0x1e7c   :  { %v3946_v39 = vpop.eup %3945 }
0x1e7d   :  { %v2335_v40 = vmul.f32 0.7889279, %v3946_v39 }
0x1e7f   :  { %v2336_v42 = vadd.f32 0.010553604, %v2335_v40 }
0x1e81   :  { %vm2339_vm7 = vcmp.lt.f32.partialorder %v3212_v9, %v2336_v42  ;;  %v3223_v9 = vld [vmem:[%s4618_s1 + $0x30] sm:$0xff] }
0x1e82   :  { %vm2351_vm8 = vmand %vm2339_vm7, %vm2350_vm6 }
0x1e83   :  { %v2355_v47 = vsel %vm2351_vm8, 1.0, %v2353_v12  ;;  %vm2357_vm11 = vmand %vm2356_vm9, %vm2339_vm7 }
0x1e84   :  { %v2358_v49 = vsel %vm2357_vm11, 5.0, %v2341_v43  ;;  %2363 = vrot.lane.b32.xlu0 %v2355_v47, %s3988_s26  ;;  %vm2343_vm12 = vmand %vm2339_vm7, %vm2342_vm10 }
0x1e85   :  { %2359 = vst.msk [vmem:[#allocation5] sm:$0xff] %vm55_vm4, %v2358_v49  ;;  %v2344_v50 = vsel %vm2343_vm12, %v3942_v22, %v2340_v44 }
0x1e86   :  { %2345 = vst.msk [vmem:[#allocation4] sm:$0xff] %vm55_vm4, %v2344_v50 }
0x1e8c   :  { %v2723_v43 = vld [vmem:[#allocation5] sm:$0xff] }
0x1e8d   :  { %v2722_v44 = vld [vmem:[#allocation4] sm:$0xff]  ;;  %vm2738_vm7 = vcmp.eq.f32.partialorder %v2723_v43, -1.0 }
0x1e8e   :  { %vm2724_vm8 = vcmp.eq.f32.partialorder %v2722_v44, 0.0 }
0x1ef6   :  { %v2364_v51 = vpop.permute.xlu0 %2363 }
0x1ef7   :  { %2366 = vst.msk [vmem:[#allocation2] sm:$0xff] %vm456_vm13, %v2364_v51 }
0x1efe   :  { %v2367_v52 = vld [vmem:[#allocation2] sm:$0xff] }
0x1eff   :  { %3630 = vmatmul.mubr.msk.f32.vlgmr.msra.gmra.mrb[26].mxu1 %vm51_vm1, %v2367_v52  ;;  %vm2728_vm14 = vcmp.eq.f32.partialorder %v2367_v52, 0.0 }
0x1f00   :  { %3644 = vmatpush3.msk.msra.mxu1 %vm63_vm2, %v4509_v53  ;;  %3645 = vmatprep.mubr.msk.f32.mxu1 %vm3985_vm0, %v3986_v4  ;;  %v2729_v14 = vsel %vm2728_vm14, 1, %v3990_v46 }
0x1f01   :  { %3819 = vmatprep.subr.bf16.mxu1 %v3984_v0 }
0x1fd2   :  { %v2439_v55 = vpop.f32.mrb[26].mxu1 }
0x1fd3   :  { %v2443_v45 = vadd.f32 %v3213_v54, %v2439_v55  ;;  %v3631_v56 = vpop.f32.mrb[27].mxu1  ;;  %v3224_v54 = vld [vmem:[%s4611_s0 + $0x38] sm:$0xff] }
0x1fd5   :  { %3947 = vtanh.f32 %v2443_v45  ;;  %v3216_v58 = vmul.f32 -1.442695, %v2443_v45 }
0x1fd7   :  { %3949 = vpow2.f32 %v3216_v58 }
0x1fdf   :  { %v3948_v57 = vpop.eup %3947 }
0x1fe0   :  { %2458 = vrot.lane.b32.xlu0 %v3948_v57, %s3987_s25 }
0x1fe1   :  { %v3950_v59 = vpop.eup %3949 }
0x1fe2   :  { %v2447_v60 = vadd.f32 1.0, %v3950_v59 }
0x1fe4   :  { %3951 = vrcp.f32 %v2447_v60 }
0x1fee   :  { %v3952_v62 = vpop.eup %3951 }
0x1fef   :  { %v2456_v6 = vmul.f32 %v3952_v62, %v2454_v3 }
0x2052   :  { %v2459_v1 = vpop.permute.xlu0 %2458 }
0x2053   :  { %v2461_v2 = vmul.f32 %v3952_v62, %v2459_v1 }
0x2055   :  { %2463 = vrot.lane.b32.xlu0 %v2461_v2, %s3988_s26 }
0x20c7   :  { %v2464_v10 = vpop.permute.xlu0 %2463 }
0x20c8   :  { %v2466_v11 = vadd.f32 %v2464_v10, %v2456_v6 }
0x20ca   :  { %3953 = vtanh.f32 %v2466_v11 }
0x20d4   :  { %v3954_v12 = vpop.eup %3953 }
0x20d5   :  { %2469 = vrot.lane.b32.xlu1 %v3954_v12, %s3987_s25 }
0x20d9   :  { %2730 = vrot.lane.b32.xlu1 %v2729_v14, %s3989_s3 }
0x2147   :  { %v2470_v15 = vpop.permute.xlu1 %2469 }
0x2148   :  { %v2472_v16 = vmul.f32 %v3952_v62, %v2470_v15 }
0x214a   :  { %2479 = vrot.lane.b32.xlu0 %v2472_v16, %s3988_s26 }
0x214e   :  { %2734 = vrot.lane.b32.xlu0 %v2367_v52, %s3989_s3 }
0x2152   :  { %2474 = vrot.lane.b32.xlu0 %v2466_v11, %s3989_s3 }
0x21bc   :  { %v2480_v18 = vpop.permute.xlu0 %2479 }
0x21bd   :  { %2743 = vst.msk [vmem:[#allocation2] sm:$0xff] %vm53_vm3, %v2480_v18  ;;  %3641 = vmatmul.mubr.msk.f32.vlgmr.msra.gmra.mrb[22].mxu0 %vm53_vm3, %v2480_v18 }
0x21be   :  { %3827 = vmatpush3.bf16.msra.mxu0 %v4059_v5  ;;  %3669 = vmatprep.mubr.msk.f32.mxu0 %vm3985_vm0, %v3986_v4 }
0x21bf   :  { %3828 = vmatprep.subr.bf16.mxu0 %v3984_v0 }
0x21c0   :  { %v2735_v19 = vpop.permute.xlu0 %2734 }
0x21c2   :  { %3830 = vmatpush3.bf16.msra.mxu0 %v4070_v7 }
0x21c3   :  { %3667 = vmatprep.subr.mxu0 %v3986_v4 }
0x21c4   :  { %v2475_v20 = vpop.permute.xlu0 %2474 }
0x21c5   :  { %2477 = vst.msk [vmem:[#allocation3] sm:$0xff] %vm53_vm3, %v2475_v20 }
0x21c6   :  { %3668 = vmatpush3.msk.msra.mxu0 %vm63_vm2, %v4404_v13 }
0x21c7   :  { %3683 = vmatprep.subr.mxu0 %v3986_v4 }
0x21cc   :  { %v2833_v21 = vld [vmem:[#allocation3] sm:$0xff] }
0x21cd   :  { %2835 = vrot.lane.b32.xlu0 %v2833_v21, %s3988_s26 }
0x223f   :  { %v2836_v2 = vpop.permute.xlu0 %2835 }
0x2290   :  { %v2549_v5 = vpop.f32.mrb[22].mxu0 }
0x2291   :  { %v2550_v48 = vadd.f32 %v4468_v17, %v2549_v5  ;;  %v3642_v22 = vpop.f32.mrb[23].mxu0 }
0x2293   :  { %v3218_v23 = vmul.f32 -1.442695, %v2550_v48 }
0x2295   :  { %3955 = vpow2.f32 %v3218_v23 }
0x229f   :  { %v3956_v7 = vpop.eup %3955 }
0x22a0   :  { %v2556_v24 = vadd.f32 1.0, %v3956_v7 }
0x22a2   :  { %3957 = vrcp.f32 %v2556_v24  ;;  %v3084_v24 = vmul.f32 7.0, %v4488_v25 }
0x22ac   :  { %v3958_v26 = vpop.eup %3957 }
0x22ad   :  { %3646 = vmatmul.mubr.msk.f32.vlgmr.msra.gmra.mrb[28].mxu1 %vm55_vm4, %v3958_v26 }
0x22ae   :  { %3821 = vmatpush3.bf16.msra.mxu1 %v4118_v34  ;;  %3656 = vmatprep.mubr.msk.f32.mxu1 %vm3985_vm0, %v3986_v4 }
0x22af   :  { %3822 = vmatprep.subr.bf16.mxu1 %v3984_v0 }
0x22b2   :  { %3824 = vmatpush3.bf16.msra.mxu1 %v4131_v38 }
0x22b3   :  { %3831 = vmatprep.subr.bf16.mxu1 %v3984_v0 }
0x22b5   :  { %3657 = vmatmul.mubr.msk.f32.vlgmr.msra.gmra.mrb[30].mxu1 %vm53_vm3, %v2480_v18 }
0x22b6   :  { %3833 = vmatpush3.bf16.msra.mxu1 %v4106_v30  ;;  %3680 = vmatprep.mubr.msk.f32.mxu1 %vm3985_vm0, %v3986_v4 }
0x22b7   :  { %3834 = vmatprep.subr.bf16.mxu1 %v3984_v0 }
0x22ba   :  { %3836 = vmatpush3.bf16.msra.mxu1 %v4127_v37  ;;  %v2731_v37 = vpop.permute.xlu1 %2730 }
0x22bb   :  { %vm2732_vm15 = vcmp.ne.s32.totalorder %v2731_v37, 0 }
0x2380   :  { %v2628_v13 = vpop.f32.mrb[28].mxu1 }
0x2381   :  { %v3647_v27 = vpop.f32.mrb[29].mxu1 }
0x2388   :  { %v2698_v31 = vpop.f32.mrb[30].mxu1 }
0x2389   :  { %v2699_v8 = vadd.f32 %v2698_v31, %v2628_v13  ;;  %v3658_v33 = vpop.f32.mrb[31].mxu1 }
0x238a   :  { %v3234_v33 = vld [vmem:[%s4618_s1 + $0x38] sm:$0xff] }
0x238b   :  { %v2709_v35 = vadd.f32 %v2707_v29, %v2699_v8 }
0x238d   :  { %v2710_v36 = vadd.f32 %v4495_v32, %v2709_v35 }
0x238f   :  { %v3222_v30 = vmul.f32 -1.442695, %v2710_v36 }
0x2391   :  { %3959 = vpow2.f32 %v3222_v30 }
0x239b   :  { %v3960_v61 = vpop.eup %3959 }
0x239c   :  { %v2714_v39 = vadd.f32 1.0, %v3960_v61 }
0x239e   :  { %3961 = vrcp.f32 %v2714_v39 }
0x23a8   :  { %v3962_v40 = vpop.eup %3961 }
0x23a9   :  { %v2717_v41 = vmul.f32 0.7889279, %v3962_v40 }
0x23ab   :  { %v2718_v42 = vadd.f32 0.010553604, %v2717_v41 }
0x23ad   :  { %vm2721_vm5 = vcmp.lt.f32.partialorder %v3223_v9, %v2718_v42 }
0x23ae   :  { %vm2733_vm6 = vmand %vm2721_vm5, %vm2732_vm15 }
0x23af   :  { %v2737_v47 = vsel %vm2733_vm6, 1.0, %v2735_v19  ;;  %vm2739_vm9 = vmand %vm2738_vm7, %vm2721_vm5 }
0x23b0   :  { %v2740_v49 = vsel %vm2739_vm9, 6.0, %v2723_v43  ;;  %2745 = vrot.lane.b32.xlu1 %v2737_v47, %s3988_s26  ;;  %vm2725_vm10 = vmand %vm2721_vm5, %vm2724_vm8 }
0x23b1   :  { %2741 = vst.msk [vmem:[#allocation5] sm:$0xff] %vm55_vm4, %v2740_v49  ;;  %v2726_v50 = vsel %vm2725_vm10, %v3958_v26, %v2722_v44  ;;  %v3089_v26 = vrot.slane %v3084_v24, %v4193_v63 }
0x23b2   :  { %2727 = vst.msk [vmem:[#allocation4] sm:$0xff] %vm55_vm4, %v2726_v50 }
0x23b8   :  { %v3105_v35 = vld [vmem:[#allocation5] sm:$0xff] }
0x23b9   :  { %v3104_v63 = vld [vmem:[#allocation4] sm:$0xff]  ;;  %vm3120_vm11 = vcmp.eq.f32.partialorder %v3105_v35, -1.0 }
0x23ba   :  { %vm3106_vm12 = vcmp.eq.f32.partialorder %v3104_v63, 0.0 }
0x2422   :  { %v2746_v51 = vpop.permute.xlu1 %2745 }
0x2423   :  { %2748 = vst.msk [vmem:[#allocation2] sm:$0xff] %vm456_vm13, %v2746_v51 }
0x242a   :  { %v2749_v52 = vld [vmem:[#allocation2] sm:$0xff] }
0x242b   :  { %3670 = vmatmul.mubr.msk.f32.vlgmr.msra.gmra.mrb[24].mxu0 %vm51_vm1, %v2749_v52  ;;  %vm3110_vm1 = vcmp.eq.f32.partialorder %v2749_v52, 0.0 }
0x242c   :  { %3684 = vmatpush3.msk.msra.mxu0 %vm63_vm2, %v4509_v53  ;;  %3685 = vmatprep.mubr.msk.f32.mxu0 %vm3985_vm0, %v3986_v4  ;;  %v3111_v12 = vsel %vm3110_vm1, 1, %v3990_v46 }
0x242d   :  { %3837 = vmatprep.subr.bf16.mxu0 %v3984_v0 }
0x24fe   :  { %v2821_v55 = vpop.f32.mrb[24].mxu0 }
0x24ff   :  { %v2825_v45 = vadd.f32 %v3224_v54, %v2821_v55  ;;  %v3671_v56 = vpop.f32.mrb[25].mxu0 }
0x2501   :  { %3963 = vtanh.f32 %v2825_v45  ;;  %v3227_v58 = vmul.f32 -1.442695, %v2825_v45 }
0x2503   :  { %3965 = vpow2.f32 %v3227_v58 }
0x250b   :  { %v3964_v57 = vpop.eup %3963 }
0x250c   :  { %2840 = vrot.lane.b32.xlu1 %v3964_v57, %s3987_s25 }
0x250d   :  { %v3966_v59 = vpop.eup %3965 }
0x250e   :  { %v2829_v53 = vadd.f32 1.0, %v3966_v59 }
0x2510   :  { %3967 = vrcp.f32 %v2829_v53 }
0x251a   :  { %v3968_v60 = vpop.eup %3967 }
0x251b   :  { %v2838_v3 = vmul.f32 %v3968_v60, %v2836_v2 }
0x257e   :  { %v2841_v62 = vpop.permute.xlu1 %2840 }
0x257f   :  { %v2843_v1 = vmul.f32 %v3968_v60, %v2841_v62 }
0x2581   :  { %2845 = vrot.lane.b32.xlu1 %v2843_v1, %s3988_s26 }
0x25f3   :  { %v2846_v6 = vpop.permute.xlu1 %2845 }
0x25f4   :  { %v2848_v10 = vadd.f32 %v2846_v6, %v2838_v3 }
0x25f6   :  { %3969 = vtanh.f32 %v2848_v10 }
0x2600   :  { %v3970_v11 = vpop.eup %3969 }
0x2601   :  { %2851 = vrot.lane.b32.xlu0 %v3970_v11, %s3987_s25 }
0x2605   :  { %3112 = vrot.lane.b32.xlu0 %v3111_v12, %s3989_s3 }
0x2609   :  { %2856 = vrot.lane.b32.xlu0 %v2848_v10, %s3989_s3 }
0x2673   :  { %v2852_v14 = vpop.permute.xlu0 %2851 }
0x2674   :  { %v2854_v15 = vmul.f32 %v3968_v60, %v2852_v14 }
0x2676   :  { %2861 = vrot.lane.b32.xlu1 %v2854_v15, %s3988_s26 }
0x2677   :  { %v3113_v16 = vpop.permute.xlu0 %3112 }
0x267a   :  { %3116 = vrot.lane.b32.xlu1 %v2749_v52, %s3989_s3 }
0x267b   :  { %v2857_v18 = vpop.permute.xlu0 %2856 }
0x267c   :  { %2859 = vst.msk [vmem:[#allocation3] sm:$0xff] %vm53_vm3, %v2857_v18 }
0x26e8   :  { %v2862_v19 = vpop.permute.xlu1 %2861 }
0x26e9   :  { %3125 = vst.msk [vmem:[#allocation2] sm:$0xff] %vm53_vm3, %v2862_v19  ;;  %3681 = vmatmul.mubr.msk.f32.vlgmr.msra.gmra.mrb[32].mxu1 %vm53_vm3, %v2862_v19 }
0x26ec   :  { %v3117_v36 = vpop.permute.xlu1 %3116 }
0x27bc   :  { %v2931_v46 = vpop.f32.mrb[32].mxu1 }
0x27bd   :  { %v2932_v20 = vadd.f32 %v4468_v17, %v2931_v46  ;;  %v3682_v21 = vpop.f32.mrb[33].mxu1 }
0x27bf   :  { %v3229_v5 = vmul.f32 -1.442695, %v2932_v20 }
0x27c1   :  { %3971 = vpow2.f32 %v3229_v5 }
0x27cb   :  { %v3972_v48 = vpop.eup %3971 }
0x27cc   :  { %v2938_v22 = vadd.f32 1.0, %v3972_v48 }
0x27ce   :  { %3973 = vrcp.f32 %v2938_v22 }
0x27d8   :  { %v3974_v23 = vpop.eup %3973 }
0x27d9   :  { %3686 = vmatmul.mubr.msk.f32.vlgmr.msra.gmra.mrb[26].mxu0 %vm55_vm4, %v3974_v23 }
0x27da   :  { %3839 = vmatpush3.bf16.msra.mxu0 %v4118_v34  ;;  %3696 = vmatprep.mubr.msk.f32.mxu0 %vm3985_vm0, %v3986_v4  ;;  %vm3114_vm0 = vcmp.ne.s32.totalorder %v3113_v16, 0 }
0x27db   :  { %3840 = vmatprep.subr.bf16.mxu0 %v3984_v0 }
0x27de   :  { %3842 = vmatpush3.bf16.msra.mxu0 %v4131_v38 }
0x27e1   :  { %3697 = vmatmul.mubr.msk.f32.vlgmr.msra.gmra.mrb[28].mxu0 %vm53_vm3, %v2862_v19 }
0x28ac   :  { %v3010_v17 = vpop.f32.mrb[26].mxu0 }
0x28ad   :  { %v3687_v7 = vpop.f32.mrb[27].mxu0 }
0x28b4   :  { %v3080_v13 = vpop.f32.mrb[28].mxu0 }
0x28b5   :  { %v3081_v27 = vadd.f32 %v3080_v13, %v3010_v17  ;;  %v3698_v28 = vpop.f32.mrb[29].mxu0 }
0x28b7   :  { %v3091_v29 = vadd.f32 %v3089_v26, %v3081_v27 }
0x28b9   :  { %v3092_v34 = vadd.f32 %v4495_v32, %v3091_v29 }
0x28bb   :  { %v3233_v31 = vmul.f32 -1.442695, %v3092_v34 }
0x28bd   :  { %3975 = vpow2.f32 %v3233_v31 }
0x28c7   :  { %v3976_v4 = vpop.eup %3975 }
0x28c8   :  { %v3096_v0 = vadd.f32 1.0, %v3976_v4 }
0x28ca   :  { %3977 = vrcp.f32 %v3096_v0 }
0x28d4   :  { %v3978_v38 = vpop.eup %3977 }
0x28d5   :  { %v3099_v8 = vmul.f32 0.7889279, %v3978_v38 }
0x28d7   :  { %v3100_v25 = vadd.f32 0.010553604, %v3099_v8 }
0x28d9   :  { %vm3103_vm2 = vcmp.lt.f32.partialorder %v3234_v33, %v3100_v25 }
0x28da   :  { %vm3115_vm3 = vmand %vm3103_vm2, %vm3114_vm0 }
0x28db   :  { %v3119_v32 = vsel %vm3115_vm3, 1.0, %v3117_v36  ;;  %vm3121_vm14 = vmand %vm3120_vm11, %vm3103_vm2 }
0x28dc   :  { %v3122_v30 = vsel %vm3121_vm14, 7.0, %v3105_v35  ;;  %3127 = vrot.lane.b32.xlu1 %v3119_v32, %s3988_s26  ;;  %vm3107_vm15 = vmand %vm3103_vm2, %vm3106_vm12 }
0x28dd   :  { %3123 = vst.msk [vmem:[#allocation5] sm:$0xff] %vm55_vm4, %v3122_v30  ;;  %v3108_v61 = vsel %vm3107_vm15, %v3974_v23, %v3104_v63 }
0x28de   :  { %3109 = vst.msk [vmem:[#allocation4] sm:$0xff] %vm55_vm4, %v3108_v61 }
0x28e4   :  { %v3132_v39 = vld [vmem:[#allocation5] sm:$0xff] }
0x28e5   :  { %vm3136_vm5 = vcmp.eq.f32.partialorder %v3132_v39, -1.0  ;;  %v3131_v40 = vld [vmem:[#allocation4] sm:$0xff] }
0x28e6   :  { %v3137_v41 = vsel %vm3136_vm5, 7.0, %v3132_v39  ;;  %vm3133_vm6 = vcmp.eq.f32.partialorder %v3131_v40, 0.0 }
0x28e7   :  { %3138 = vst.msk [vmem:[%s4619_s10] sm:$0xff] %vm55_vm4, %v3137_v41  ;;  %v3134_v37 = vsel %vm3133_vm6, %v3974_v23, %v3131_v40 }
0x28e8   :  { %3135 = vst.msk [vmem:[%s4620_s9] sm:$0xff] %vm55_vm4, %v3134_v37 }
0x294e   :  { %v3128_v9 = vpop.permute.xlu1 %3127 }
0x294f   :  { %3130 = vst.msk [vmem:[#allocation2] sm:$0xff] %vm456_vm13, %v3128_v9 }

</bundles_post_ra>
